<compile_context>
chip_gen: v5e
topology: v5e:2x2
jax: 0.10.0
libtpu: 0.0.40
codegen_flags: <defaults>
</compile_context>

<pallas_src>
import numpy as np
import jax
import jax.numpy as jnp
from jax.experimental import pallas as pl
from jax.experimental.pallas import tpu as pltpu

NUM_TO_SUBSAMPLE = 8
HIDDEN = 256


def _round_up(v, m):
    return ((v + m - 1) // m) * m


def _pick_tile_b(B):
    """Batch-tile rows: fill the MXU M dimension per generation, 16-row floor."""
    try:
        kind = jax.devices()[0].device_kind.lower()
    except Exception:
        kind = ""
    cap = 128 if "v5" in kind else 256          # v5e: 4x128^2 MXU; v6e/v7x: 2x256^2
    return min(cap, _round_up(max(B, 1), 16))


def _encoder_kernel(x_ref, tw_ref, w1_ref, b1_ref, w2_ref, b2_ref, out_ref):
    # tw is (2N, 2*KC): columns [0:KC) are windowed cos (both channels, permuted
    # frequencies), [KC:2KC) the matching sin columns.  KC = 2 * num_frequencies.
    KC = tw_ref.shape[1] // 2

    # Fused windowed DFT of BOTH channels in one MXU pass (bf16 operands, f32 acc).
    xb = x_ref[...].astype(jnp.bfloat16)                              # (TB, 2N)
    y = jnp.dot(xb, tw_ref[...], preferred_element_type=jnp.float32)  # (TB, 2KC)
    re = y[:, :KC]
    im = y[:, KC:]                      # sign of sin block irrelevant (squared)

    # magnitude -> log, exactly as the PyTorch module (sqrt/log are EUP ops: ~free).
    logm = jnp.log(jnp.sqrt(re * re + im * im) + 1e-5)                # (TB, KC) f32

    # MaxPool1d(kernel=8, stride=8), both channels at once, via an XLU roll-tree.
    # Column c = s*(2G) + ch*G + j holds frequency 8*j + s of channel ch, so maxing
    # over shifts KC/2, KC/4, ..., 2G leaves pooled group (ch, j) in lane ch*G + j.
    t = logm
    shift = KC // 2
    stop = KC // NUM_TO_SUBSAMPLE       # = 2G
    while shift >= stop:
        t = jnp.maximum(t, pltpu.roll(t, shift, axis=1))
        shift //= 2

    # linear1 -> relu -> linear2 -> relu.  w1/w2 are zero-padded block-diagonal bf16
    # weights, so the full lane-dense (TB, KC) roll-tree result feeds the MXU directly
    # (no lane-sparse slice) and the output lands in the torch.cat(dim=1) layout.
    h1 = jnp.dot(t.astype(jnp.bfloat16), w1_ref[...],
                 preferred_element_type=jnp.float32) + b1_ref[...]
    h1 = jnp.maximum(h1, 0.0)
    h2 = jnp.dot(h1.astype(jnp.bfloat16), w2_ref[...],
                 preferred_element_type=jnp.float32) + b2_ref[...]
    out_ref[...] = jnp.maximum(h2, 0.0)                               # (TB, 2*HIDDEN)


def make_params(num_samples, key):
    """f32 reference parameters (natural layout), matching the PyTorch module init style."""
    N = num_samples
    K = N // 2
    G = K // NUM_TO_SUBSAMPLE

    n = np.arange(N, dtype=np.float64)
    # torch.hamming_window default: periodic=True, alpha=0.54, beta=0.46
    win = (0.54 - 0.46 * np.cos(2.0 * np.pi * n / N)).astype(np.float32)

    k1, k2, k3, k4 = jax.random.split(key, 4)
    lim1 = 1.0 / np.sqrt(G)
    lim2 = 1.0 / np.sqrt(HIDDEN)
    w1 = jax.random.uniform(k1, (G, HIDDEN), jnp.float32, -lim1, lim1)
    b1 = jax.random.uniform(k2, (HIDDEN,), jnp.float32, -lim1, lim1)
    w2 = jax.random.uniform(k3, (HIDDEN, HIDDEN), jnp.float32, -lim2, lim2)
    b2 = jax.random.uniform(k4, (HIDDEN,), jnp.float32, -lim2, lim2)
    return jnp.asarray(win), w1, b1, w2, b2


def prepare_kernel_params(params, num_samples):
    """Kernel constants: window-folded, channel-deinterleaving, permuted DFT twiddles
    plus block-diagonal (per-channel) bf16 MLP weights and duplicated f32 biases."""
    win, w1, b1, w2, b2 = params
    N = num_samples
    K = N // 2                      # num_frequencies kept per channel
    G = K // NUM_TO_SUBSAMPLE       # pooled features per channel
    KC = 2 * K                      # both channels' frequency columns

    # The roll-tree pool assumes power-of-two, lane-dense widths (true for N=256).
    assert K % NUM_TO_SUBSAMPLE == 0
    assert (KC & (KC - 1)) == 0 and KC % 128 == 0, "pool roll-tree needs pow2, lane-aligned KC"
    assert (NUM_TO_SUBSAMPLE & (NUM_TO_SUBSAMPLE - 1)) == 0

    win64 = np.asarray(win, np.float64)
    n = np.arange(N, dtype=np.float64)
    k = np.arange(K, dtype=np.float64)
    ang = 2.0 * np.pi * np.outer(n, k) / N                 # (N, K)
    cosm = win64[:, None] * np.cos(ang)                    # window folded in
    sinm = win64[:, None] * np.sin(ang)

    # frequency k = 8*j + s of channel c goes to column s*(2G) + c*G + j
    j = np.arange(K) // NUM_TO_SUBSAMPLE
    s = np.arange(K) % NUM_TO_SUBSAMPLE
    tw = np.zeros((2 * N, 2 * KC), dtype=np.float64)       # rows 2n+c <- x[:, n, c]
    rows = 2 * np.arange(N)[:, None]
    for c in (0, 1):
        cols = (s * (2 * G) + c * G + j)[None, :]
        tw[rows + c, cols] = cosm
        tw[rows + c, KC + cols] = sinm

    # Block-structured linear1: pooled lanes [c*G, (c+1)*G) -> output cols of channel c;
    # all other rows (garbage roll-tree lanes) are exactly zero.
    w1_np = np.asarray(w1, np.float64)
    w1_big = np.zeros((KC, 2 * HIDDEN), dtype=np.float64)
    w2_np = np.asarray(w2, np.float64)
    w2_big = np.zeros((2 * HIDDEN, 2 * HIDDEN), dtype=np.float64)
    for c in (0, 1):
        w1_big[c * G:(c + 1) * G, c * HIDDEN:(c + 1) * HIDDEN] = w1_np
        w2_big[c * HIDDEN:(c + 1) * HIDDEN, c * HIDDEN:(c + 1) * HIDDEN] = w2_np
    b1_big = np.tile(np.asarray(b1, np.float32), 2)[None, :]
    b2_big = np.tile(np.asarray(b2, np.float32), 2)[None, :]

    return (jnp.asarray(tw, jnp.bfloat16),                 # (2N, 2KC) bf16
            jnp.asarray(w1_big, jnp.bfloat16),             # (KC, 2H)  bf16
            jnp.asarray(b1_big, jnp.float32),              # (1, 2H)   f32
            jnp.asarray(w2_big, jnp.bfloat16),             # (2H, 2H)  bf16
            jnp.asarray(b2_big, jnp.float32))              # (1, 2H)   f32


def simple_fft_audio_encoder(x, kparams):
    """x: (B, num_samples, 2) float -> (B, 2*HIDDEN) float32 (channel-concatenated)."""
    tw, w1, b1, w2, b2 = kparams
    B, N, C = x.shape
    assert C == 2
    assert tw.shape[0] == 2 * N

    # (B, N, 2) -> (B, 2N): free reshape (row-major interleave), no transpose HBM pass.
    x2 = x.reshape(B, 2 * N)

    TILE_B = _pick_tile_b(B)
    B_pad = _round_up(B, TILE_B)
    if B_pad != B:
        x2 = jnp.pad(x2, ((0, B_pad - B), (0, 0)))
    n_bt = B_pad // TILE_B

    out = pl.pallas_call(
        _encoder_kernel,
        out_shape=jax.ShapeDtypeStruct((B_pad, 2 * HIDDEN), jnp.float32),
        grid=(n_bt,),
        in_specs=[
            pl.BlockSpec((TILE_B, 2 * N), lambda i: (i, 0)),   # interleaved audio rows
            pl.BlockSpec(tw.shape, lambda i: (0, 0)),          # fused window+DFT twiddles
            pl.BlockSpec(w1.shape, lambda i: (0, 0)),          # block linear1 weight
            pl.BlockSpec(b1.shape, lambda i: (0, 0)),          # duplicated linear1 bias
            pl.BlockSpec(w2.shape, lambda i: (0, 0)),          # block-diag linear2 weight
            pl.BlockSpec(b2.shape, lambda i: (0, 0)),          # duplicated linear2 bias
        ],
        # kernel writes the final concatenated (B, 2*HIDDEN) layout directly
        out_specs=pl.BlockSpec((TILE_B, 2 * HIDDEN), lambda i: (i, 0)),
        compiler_params=pltpu.CompilerParams(
            dimension_semantics=("parallel",)),
    )(x2, tw, w1, b1, w2, b2)

    return out[:B]


def reference(x, params):
    """Pure-JAX f32 reference mirroring the PyTorch forward (natural frequency order)."""
    win, w1, b1, w2, b2 = params

    def enc(ch):
        xw = ch.astype(jnp.float32) * win
        N = xw.shape[-1]
        K = N // 2
        ffts = jnp.fft.fft(xw.astype(jnp.complex64), axis=-1)[:, :K]
        mags = jnp.sqrt(jnp.real(ffts) ** 2 + jnp.imag(ffts) ** 2)
        logm = jnp.log(mags + 1e-5)
        pooled = jnp.max(
            logm.reshape(logm.shape[0], K // NUM_TO_SUBSAMPLE, NUM_TO_SUBSAMPLE), axis=-1)
        h1 = jnp.maximum(pooled @ w1 + b1, 0.0)
        h2 = jnp.maximum(h1 @ w2 + b2, 0.0)
        return h2

    return jnp.concatenate([enc(x[:, :, 0]), enc(x[:, :, 1])], axis=1)


if __name__ == "__main__":
    sample_rate, frameskip = 8960, 1            # num_samples = 8960 / 35 * 1 = 256
    num_samples = int(sample_rate / 35 * frameskip)
    assert num_samples * 35 == sample_rate * frameskip
    batch = 2

    key = jax.random.PRNGKey(0)
    kx, kp = jax.random.split(key)
    x = jax.random.normal(kx, (batch, num_samples, 2), jnp.float32)

    ref_params = make_params(num_samples, kp)
    kparams = prepare_kernel_params(ref_params, num_samples)

    out = jax.block_until_ready(simple_fft_audio_encoder(x, kparams))

    ref = reference(x, ref_params)
    assert out.shape == (batch, 2 * HIDDEN), out.shape
    err = float(jnp.max(jnp.abs(out - ref)) / (jnp.max(jnp.abs(ref)) + 1e-6))
    assert err < 5e-2, f"mismatch: normalized max err {err}"
    print("KERNEL_OK")
</pallas_src>

<mosaic_0001>
module attributes {stable_mosaic.version = 11 : i64} {
  func.func @_encoder_kernel(%arg0: i32, %arg1: memref<16x512xf32, #tpu.memory_space<vmem>>, %arg2: memref<512x512xbf16, #tpu.memory_space<vmem>>, %arg3: memref<256x512xbf16, #tpu.memory_space<vmem>>, %arg4: memref<1x512xf32, #tpu.memory_space<vmem>>, %arg5: memref<512x512xbf16, #tpu.memory_space<vmem>>, %arg6: memref<1x512xf32, #tpu.memory_space<vmem>>, %arg7: memref<16x512xf32, #tpu.memory_space<vmem>>) attributes {dimension_semantics = [#tpu.dimension_semantics<parallel>], iteration_bounds = array<i64: 1>, scalar_prefetch = 0 : i64, scratch_operands = 0 : i64, tpu.core_type = #tpu.core_type<tc>, window_params = [{transform_indices = @transform_0, window_bounds = array<i64: 16, 512>}, {pipeline_mode = #tpu.pipeline_mode<synchronous>, transform_indices = @transform_1, window_bounds = array<i64: 512, 512>}, {pipeline_mode = #tpu.pipeline_mode<synchronous>, transform_indices = @transform_2, window_bounds = array<i64: 256, 512>}, {pipeline_mode = #tpu.pipeline_mode<synchronous>, transform_indices = @transform_3, window_bounds = array<i64: 1, 512>}, {pipeline_mode = #tpu.pipeline_mode<synchronous>, transform_indices = @transform_4, window_bounds = array<i64: 512, 512>}, {pipeline_mode = #tpu.pipeline_mode<synchronous>, transform_indices = @transform_5, window_bounds = array<i64: 1, 512>}, {transform_indices = @transform_6, window_bounds = array<i64: 16, 512>}]} {
    %c0 = arith.constant 0 : index
    %c0_0 = arith.constant 0 : index
    %0 = vector.load %arg1[%c0, %c0_0] : memref<16x512xf32, #tpu.memory_space<vmem>>, vector<16x512xf32>
    %1 = arith.truncf %0 : vector<16x512xf32> to vector<16x512xbf16>
    %c0_1 = arith.constant 0 : index
    %c0_2 = arith.constant 0 : index
    %2 = vector.load %arg2[%c0_1, %c0_2] : memref<512x512xbf16, #tpu.memory_space<vmem>>, vector<512x512xbf16>
    %cst = arith.constant dense<0.000000e+00> : vector<16x512xf32>
    %3 = tpu.matmul %1, %2, %cst {dimension_numbers = #tpu.dot_dimension_numbers<[1], [0], [0], [1], [0, 0, 1, 1], [], []>} : vector<16x512xbf16>, vector<512x512xbf16>, vector<16x512xf32> -> vector<16x512xf32>
    %4 = vector.extract_strided_slice %3 {offsets = [0, 0], sizes = [16, 256], strides = [1, 1]} : vector<16x512xf32> to vector<16x256xf32>
    %5 = vector.extract_strided_slice %3 {offsets = [0, 256], sizes = [16, 256], strides = [1, 1]} : vector<16x512xf32> to vector<16x256xf32>
    %6 = arith.mulf %4, %4 : vector<16x256xf32>
    %7 = arith.mulf %5, %5 : vector<16x256xf32>
    %8 = arith.addf %6, %7 : vector<16x256xf32>
    %9 = math.sqrt %8 : vector<16x256xf32>
    %cst_3 = arith.constant 9.99999974E-6 : f32
    %10 = vector.broadcast %cst_3 : f32 to vector<16x256xf32>
    %11 = arith.addf %9, %10 : vector<16x256xf32>
    %12 = math.log %11 : vector<16x256xf32>
    %c128_i32 = arith.constant 128 : i32
    %13 = tpu.dynamic_rotate %12 by %c128_i32 dim 1 : vector<16x256xf32>, i32 -> vector<16x256xf32>
    %14 = arith.maximumf %12, %13 : vector<16x256xf32>
    %c64_i32 = arith.constant 64 : i32
    %15 = tpu.dynamic_rotate %14 by %c64_i32 dim 1 : vector<16x256xf32>, i32 -> vector<16x256xf32>
    %16 = arith.maximumf %14, %15 : vector<16x256xf32>
    %c32_i32 = arith.constant 32 : i32
    %17 = tpu.dynamic_rotate %16 by %c32_i32 dim 1 : vector<16x256xf32>, i32 -> vector<16x256xf32>
    %18 = arith.maximumf %16, %17 : vector<16x256xf32>
    %19 = arith.truncf %18 : vector<16x256xf32> to vector<16x256xbf16>
    %c0_4 = arith.constant 0 : index
    %c0_5 = arith.constant 0 : index
    %20 = vector.load %arg3[%c0_4, %c0_5] : memref<256x512xbf16, #tpu.memory_space<vmem>>, vector<256x512xbf16>
    %cst_6 = arith.constant dense<0.000000e+00> : vector<16x512xf32>
    %21 = tpu.matmul %19, %20, %cst_6 {dimension_numbers = #tpu.dot_dimension_numbers<[1], [0], [0], [1], [0, 0, 1, 1], [], []>} : vector<16x256xbf16>, vector<256x512xbf16>, vector<16x512xf32> -> vector<16x512xf32>
    %c0_7 = arith.constant 0 : index
    %c0_8 = arith.constant 0 : index
    %22 = vector.load %arg4[%c0_7, %c0_8] : memref<1x512xf32, #tpu.memory_space<vmem>>, vector<1x512xf32>
    %23 = vector.broadcast %22 : vector<1x512xf32> to vector<16x512xf32>
    %24 = arith.addf %21, %23 : vector<16x512xf32>
    %cst_9 = arith.constant 0.000000e+00 : f32
    %25 = vector.broadcast %cst_9 : f32 to vector<16x512xf32>
    %26 = arith.maximumf %24, %25 : vector<16x512xf32>
    %27 = arith.truncf %26 : vector<16x512xf32> to vector<16x512xbf16>
    %c0_10 = arith.constant 0 : index
    %c0_11 = arith.constant 0 : index
    %28 = vector.load %arg5[%c0_10, %c0_11] : memref<512x512xbf16, #tpu.memory_space<vmem>>, vector<512x512xbf16>
    %cst_12 = arith.constant dense<0.000000e+00> : vector<16x512xf32>
    %29 = tpu.matmul %27, %28, %cst_12 {dimension_numbers = #tpu.dot_dimension_numbers<[1], [0], [0], [1], [0, 0, 1, 1], [], []>} : vector<16x512xbf16>, vector<512x512xbf16>, vector<16x512xf32> -> vector<16x512xf32>
    %c0_13 = arith.constant 0 : index
    %c0_14 = arith.constant 0 : index
    %30 = vector.load %arg6[%c0_13, %c0_14] : memref<1x512xf32, #tpu.memory_space<vmem>>, vector<1x512xf32>
    %31 = vector.broadcast %30 : vector<1x512xf32> to vector<16x512xf32>
    %32 = arith.addf %29, %31 : vector<16x512xf32>
    %cst_15 = arith.constant 0.000000e+00 : f32
    %33 = vector.broadcast %cst_15 : f32 to vector<16x512xf32>
    %34 = arith.maximumf %32, %33 : vector<16x512xf32>
    %c0_16 = arith.constant 0 : index
    %c0_17 = arith.constant 0 : index
    %35 = vector.load %arg7[%c0_16, %c0_17] : memref<16x512xf32, #tpu.memory_space<vmem>>, vector<16x512xf32>
    tpu.vector_store %arg7[%c0_16, %c0_17], %34 {strides = array<i32>} : memref<16x512xf32, #tpu.memory_space<vmem>>, vector<16x512xf32>,
    return
  }
  func.func @transform_0(%arg0: i32) -> (i32, i32) {
    %c0_i32 = arith.constant 0 : i32
    %c0_i32_0 = arith.constant 0 : i32
    return %arg0, %c0_i32 : i32, i32
  }
  func.func @transform_1(%arg0: i32) -> (i32, i32) {
    %c0_i32 = arith.constant 0 : i32
    %c0_i32_0 = arith.constant 0 : i32
    %c0_i32_1 = arith.constant 0 : i32
    return %c0_i32, %c0_i32_0 : i32, i32
  }
  func.func @transform_2(%arg0: i32) -> (i32, i32) {
    %c0_i32 = arith.constant 0 : i32
    %c0_i32_0 = arith.constant 0 : i32
    %c0_i32_1 = arith.constant 0 : i32
    return %c0_i32, %c0_i32_0 : i32, i32
  }
  func.func @transform_3(%arg0: i32) -> (i32, i32) {
    %c0_i32 = arith.constant 0 : i32
    %c0_i32_0 = arith.constant 0 : i32
    %c0_i32_1 = arith.constant 0 : i32
    return %c0_i32, %c0_i32_0 : i32, i32
  }
  func.func @transform_4(%arg0: i32) -> (i32, i32) {
    %c0_i32 = arith.constant 0 : i32
    %c0_i32_0 = arith.constant 0 : i32
    %c0_i32_1 = arith.constant 0 : i32
    return %c0_i32, %c0_i32_0 : i32, i32
  }
  func.func @transform_5(%arg0: i32) -> (i32, i32) {
    %c0_i32 = arith.constant 0 : i32
    %c0_i32_0 = arith.constant 0 : i32
    %c0_i32_1 = arith.constant 0 : i32
    return %c0_i32, %c0_i32_0 : i32, i32
  }
  func.func @transform_6(%arg0: i32) -> (i32, i32) {
    %c0_i32 = arith.constant 0 : i32
    %c0_i32_0 = arith.constant 0 : i32
    return %arg0, %c0_i32 : i32, i32
  }
}

</mosaic_0001>

<bundles_post_ra>
// kernel: tpu_custom_call.1
= control target key start
LH: loop header
LB: loop body
LE: loop exit
PB: predicated region body
PF: predicated region fallthrough
CT: control target
= control target key end

     0   :  { %11 = vsyncpa [#allocation3], 0  ;;  %s4726_s0 = inlined_call_operand.hbm [shape: f32[16,512], index: 0, kind: input, shape index: {}]   ;;  %s4727_s1 = inlined_call_operand.hbm [shape: bf16[512,512], index: 1, kind: input, shape index: {}]   ;;  %s4728_s2 = inlined_call_operand.hbm [shape: bf16[256,512], index: 2, kind: input, shape index: {}]   ;;  %s4729_s3 = inlined_call_operand.hbm [shape: f32[1,512], index: 3, kind: input, shape index: {}]   ;;  %s4730_s4 = inlined_call_operand.hbm [shape: bf16[512,512], index: 4, kind: input, shape index: {}]   ;;  %s4731_s5 = inlined_call_operand.vmem [shape: f32[1,512], index: 5, kind: input, shape index: {}]   ;;  %s4732_s6 = inlined_call_operand.hbm [shape: f32[16,512], index: 6, kind: output, shape index: {}]  }
   0x1   :  { %12 = vsyncpa [#allocation6], 0 }
   0x2   :  { %13 = vsyncpa [#allocation9], 0  ;;  %s32_s23 = sshll.u32 %s4727_s1, 4  ;;  %s33_s23 = int_to_ptr.hbm [resolvable:$true] %s32_s23 }
   0x3   :  { %14 = vsyncpa [#allocation4], 0  ;;  %s4539_s24 = smov [#allocation5]   ;;  %s59_s28 = sshll.u32 %s4729_s3, 4  ;;  %s60_s28 = int_to_ptr.hbm [resolvable:$true] %s59_s28 }
   0x4   :  { %s34_s25 = sshll.u32 %s4539_s24, 4  ;;  %s4540_s29 = smov 256   ;;  %s35_s25 = int_to_ptr.vmem [resolvable:$true] %s34_s25 }
   0x5   :  { %s4541_s30 = smov 16   ;;  %s4542_s7 = smov [#allocation8]  }
   0x6   :  { %40 = dma.hbm_to_vmem [thread:$0]  %s33_s23, 16384, %s35_s25, [#allocation6], %s4540_s29, %s4540_s29, %s4541_s30  }
   0x7   :  { %s61_s8 = sshll.u32 %s4542_s7, 4  ;;  %s19_s10 = sshll.u32 %s4726_s0, 4  ;;  %s62_s8 = int_to_ptr.vmem [resolvable:$true] %s61_s8  ;;  %s20_s10 = int_to_ptr.hbm [resolvable:$true] %s19_s10 }
   0x8   :  { %64 = dma.hbm_to_vmem [thread:$0]  %s60_s28, 64, %s62_s8, [#allocation9]  }
   0x9   :  { %s4543_s11 = smov [#allocation2]   ;;  %s45_s14 = sshll.u32 %s4728_s2, 4  ;;  %s46_s14 = int_to_ptr.hbm [resolvable:$true] %s45_s14 }
   0xa   :  { %s21_s12 = sshll.u32 %s4543_s11, 4  ;;  %s4544_s15 = smov 512   ;;  %s22_s12 = int_to_ptr.vmem [resolvable:$true] %s21_s12 }
   0xb   :  { %s4545_s16 = smov 32   ;;  %s4546_s17 = smov [#allocation7]  }
   0xc   :  { %27 = dma.hbm_to_vmem [thread:$0]  %s20_s10, 1024, %s22_s12, [#allocation3], %s4544_s15, %s4544_s15, %s4545_s16  }
   0xd   :  { %s47_s18 = sshll.u32 %s4546_s17, 4  ;;  %s69_s20 = sshll.u32 %s4730_s4, 4  ;;  %s48_s18 = int_to_ptr.vmem [resolvable:$true] %s47_s18  ;;  %s70_s20 = int_to_ptr.hbm [resolvable:$true] %s69_s20 }
   0xe   :  { %53 = dma.hbm_to_vmem [thread:$0]  %s46_s14, 8192, %s48_s18, [#allocation6], %s4540_s29, %s4540_s29, %s4541_s30  }
   0xf   :  { %s4547_s2 = smov [#allocation10]  }
  0x10   :  { %s71_s21 = sshll.u32 %s4547_s2, 4  ;;  %s72_s21 = int_to_ptr.vmem [resolvable:$true] %s71_s21 }
  0x11   :  { %77 = dma.hbm_to_vmem [thread:$0]  %s70_s20, 16384, %s72_s21, [#allocation9], %s4540_s29, %s4540_s29, %s4541_s30  }
  0x12   :  { %4531 = dma.done.wait [#allocation3], 1024  }
  0x13   :  { %4532 = vsyncadd [#allocation3], 4294966272 }
  0x14   :  { %4533 = dma.done.wait [#allocation6], 24576  }
  0x15   :  { %4534 = vsyncadd [#allocation6], 4294942720 }
  0x16   :  { %4535 = dma.done.wait [#allocation9], 16448  }
  0x17   :  { %4536 = vsyncadd [#allocation9], 4294950848  ;;  %v2864_v0 = vld [vmem:[#allocation5 + $0xe0] sm:$0xf]  ;;  %v4060_v1 = vld [vmem:[#allocation5 + $0xec] sm:$0xf0] }
  0x18   :  { %v2992_v2 = vld [vmem:[#allocation5 + $0x1e0] sm:$0xf]  ;;  %v2865_v3 = vor.u32 %v4060_v1, %v2864_v0  ;;  %v4092_v4 = vld [vmem:[#allocation5 + $0x1ec] sm:$0xf0]  ;;  %s4548_s4 = smov 64   ;;  %s2735_s27 = sshll.u32 %s4732_s6, 4  ;;  %s2736_s27 = int_to_ptr.hbm [resolvable:$true] %s2735_s27 }
  0x19   :  { %v3120_v5 = vld [vmem:[#allocation5 + $0x2e0] sm:$0xf]  ;;  %v4124_v6 = vld [vmem:[#allocation5 + $0x2ec] sm:$0xf0]  ;;  %v2993_v7 = vor.u32 %v4092_v4, %v2992_v2 }
  0x1a   :  { %v3121_v8 = vor.u32 %v4124_v6, %v3120_v5  ;;  %v3248_v9 = vld [vmem:[#allocation5 + $0x3e0] sm:$0xf]  ;;  %v4156_v10 = vld [vmem:[#allocation5 + $0x3ec] sm:$0xf0]  ;;  %880 = vmatpush.bf16.msra.mxu0 %v2865_v3 }
  0x1b   :  { %v2848_v11 = vld [vmem:[#allocation5 + $0xc0] sm:$0xf]  ;;  %v3249_v12 = vor.u32 %v4156_v10, %v3248_v9  ;;  %v4056_v13 = vld [vmem:[#allocation5 + $0xcc] sm:$0xf0]  ;;  %894 = vmatpush.bf16.msra.mxu1 %v2993_v7 }
  0x1c   :  { %v2976_v14 = vld [vmem:[#allocation5 + $0x1c0] sm:$0xf]  ;;  %v4088_v15 = vld [vmem:[#allocation5 + $0x1cc] sm:$0xf0]  ;;  %908 = vmatpush.bf16.msra.mxu2 %v3121_v8  ;;  %v2849_v16 = vor.u32 %v4056_v13, %v2848_v11 }
  0x1d   :  { %v2977_v17 = vor.u32 %v4088_v15, %v2976_v14  ;;  %v3104_v18 = vld [vmem:[#allocation5 + $0x2c0] sm:$0xf]  ;;  %v4120_v19 = vld [vmem:[#allocation5 + $0x2cc] sm:$0xf0]  ;;  %922 = vmatpush.bf16.msra.mxu3 %v3249_v12 }
  0x1e   :  { %v3232_v20 = vld [vmem:[#allocation5 + $0x3c0] sm:$0xf]  ;;  %v3105_v21 = vor.u32 %v4120_v19, %v3104_v18  ;;  %v4152_v22 = vld [vmem:[#allocation5 + $0x3cc] sm:$0xf0]  ;;  %881 = vmatpush.bf16.msra.mxu0 %v2849_v16 }
  0x1f   :  { %v2832_v23 = vld [vmem:[#allocation5 + $0xa0] sm:$0xf]  ;;  %v4052_v24 = vld [vmem:[#allocation5 + $0xac] sm:$0xf0]  ;;  %v3233_v25 = vor.u32 %v4152_v22, %v3232_v20  ;;  %895 = vmatpush.bf16.msra.mxu1 %v2977_v17 }
  0x20   :  { %v2960_v26 = vld [vmem:[#allocation5 + $0x1a0] sm:$0xf]  ;;  %v4084_v27 = vld [vmem:[#allocation5 + $0x1ac] sm:$0xf0]  ;;  %v2833_v29 = vor.u32 %v4052_v24, %v2832_v23  ;;  %909 = vmatpush.bf16.msra.mxu2 %v3105_v21 }
  0x21   :  { %v3088_v28 = vld [vmem:[#allocation5 + $0x2a0] sm:$0xf]  ;;  %v4116_v30 = vld [vmem:[#allocation5 + $0x2ac] sm:$0xf0]  ;;  %v2961_v33 = vor.u32 %v4084_v27, %v2960_v26  ;;  %923 = vmatpush.bf16.msra.mxu3 %v3233_v25 }
  0x22   :  { %v3216_v31 = vld [vmem:[#allocation5 + $0x3a0] sm:$0xf]  ;;  %v4148_v32 = vld [vmem:[#allocation5 + $0x3ac] sm:$0xf0]  ;;  %v3089_v34 = vor.u32 %v4116_v30, %v3088_v28  ;;  %882 = vmatpush.bf16.msra.mxu0 %v2833_v29  ;;  %v4058_v28 = vld [vmem:[#allocation5 + $0xe4] sm:$0xf] }
  0x23   :  { %v2816_v35 = vld [vmem:[#allocation5 + $0x80] sm:$0xf]  ;;  %v4048_v36 = vld [vmem:[#allocation5 + $0x8c] sm:$0xf0]  ;;  %v3217_v38 = vor.u32 %v4148_v32, %v3216_v31  ;;  %896 = vmatpush.bf16.msra.mxu1 %v2961_v33  ;;  %v2866_v29 = vld [vmem:[#allocation5 + $0xf0] sm:$0xf0] }
  0x24   :  { %v2944_v37 = vld [vmem:[#allocation5 + $0x180] sm:$0xf]  ;;  %v4080_v39 = vld [vmem:[#allocation5 + $0x18c] sm:$0xf0]  ;;  %v2817_v44 = vor.u32 %v4048_v36, %v2816_v35  ;;  %910 = vmatpush.bf16.msra.mxu2 %v3089_v34  ;;  %v4090_v30 = vld [vmem:[#allocation5 + $0x1e4] sm:$0xf] }
  0x25   :  { %v3072_v40 = vld [vmem:[#allocation5 + $0x280] sm:$0xf]  ;;  %v4112_v41 = vld [vmem:[#allocation5 + $0x28c] sm:$0xf0]  ;;  %v2945_v45 = vor.u32 %v4080_v39, %v2944_v37  ;;  %924 = vmatpush.bf16.msra.mxu3 %v3217_v38  ;;  %v2994_v32 = vld [vmem:[#allocation5 + $0x1f0] sm:$0xf0] }
  0x26   :  { %v3200_v42 = vld [vmem:[#allocation5 + $0x380] sm:$0xf]  ;;  %v4144_v43 = vld [vmem:[#allocation5 + $0x38c] sm:$0xf0]  ;;  %v3073_v46 = vor.u32 %v4112_v41, %v3072_v40  ;;  %883 = vmatpush.bf16.msra.mxu0 %v2817_v44  ;;  %v4122_v33 = vld [vmem:[#allocation5 + $0x2e4] sm:$0xf]  ;;  %v2869_v40 = vor.u32 %v4058_v28, %v2866_v29  ;;  %v2997_v41 = vor.u32 %v4090_v30, %v2994_v32 }
  0x27   :  { %v2800_v47 = vld [vmem:[#allocation5 + $0x60] sm:$0xf]  ;;  %v4044_v48 = vld [vmem:[#allocation5 + $0x6c] sm:$0xf0]  ;;  %v3201_v50 = vor.u32 %v4144_v43, %v3200_v42  ;;  %897 = vmatpush.bf16.msra.mxu1 %v2945_v45  ;;  %v3122_v34 = vld [vmem:[#allocation5 + $0x2f0] sm:$0xf0] }
  0x28   :  { %v2928_v49 = vld [vmem:[#allocation5 + $0x160] sm:$0xf]  ;;  %v4076_v51 = vld [vmem:[#allocation5 + $0x16c] sm:$0xf0]  ;;  %v2801_v56 = vor.u32 %v4044_v48, %v2800_v47  ;;  %911 = vmatpush.bf16.msra.mxu2 %v3073_v46  ;;  %v4154_v37 = vld [vmem:[#allocation5 + $0x3e4] sm:$0xf]  ;;  %v3125_v42 = vor.u32 %v4122_v33, %v3122_v34 }
  0x29   :  { %v3056_v52 = vld [vmem:[#allocation5 + $0x260] sm:$0xf]  ;;  %v4108_v53 = vld [vmem:[#allocation5 + $0x26c] sm:$0xf0]  ;;  %v2929_v57 = vor.u32 %v4076_v51, %v2928_v49  ;;  %925 = vmatpush.bf16.msra.mxu3 %v3201_v50  ;;  %v3250_v38 = vld [vmem:[#allocation5 + $0x3f0] sm:$0xf0] }
  0x2a   :  { %v3184_v54 = vld [vmem:[#allocation5 + $0x360] sm:$0xf]  ;;  %v4140_v55 = vld [vmem:[#allocation5 + $0x36c] sm:$0xf0]  ;;  %v3057_v58 = vor.u32 %v4108_v53, %v3056_v52  ;;  %884 = vmatpush.bf16.msra.mxu0 %v2801_v56  ;;  %v4054_v43 = vld [vmem:[#allocation5 + $0xc4] sm:$0xf]  ;;  %v3253_v46 = vor.u32 %v4154_v37, %v3250_v38 }
  0x2b   :  { %v2784_v59 = vld [vmem:[#allocation5 + $0x40] sm:$0xf]  ;;  %v4040_v60 = vld [vmem:[#allocation5 + $0x4c] sm:$0xf0]  ;;  %v3185_v62 = vor.u32 %v4140_v55, %v3184_v54  ;;  %898 = vmatpush.bf16.msra.mxu1 %v2929_v57  ;;  %v2850_v44 = vld [vmem:[#allocation5 + $0xd0] sm:$0xf0] }
  0x2c   :  { %v2912_v61 = vld [vmem:[#allocation5 + $0x140] sm:$0xf]  ;;  %v4072_v63 = vld [vmem:[#allocation5 + $0x14c] sm:$0xf0]  ;;  %v2785_v4 = vor.u32 %v4040_v60, %v2784_v59  ;;  %912 = vmatpush.bf16.msra.mxu2 %v3057_v58  ;;  %v4086_v45 = vld [vmem:[#allocation5 + $0x1c4] sm:$0xf]  ;;  %v2853_v52 = vor.u32 %v4054_v43, %v2850_v44 }
  0x2d   :  { %v3040_v0 = vld [vmem:[#allocation5 + $0x240] sm:$0xf]  ;;  %v4104_v1 = vld [vmem:[#allocation5 + $0x24c] sm:$0xf0]  ;;  %v2913_v5 = vor.u32 %v4072_v63, %v2912_v61  ;;  %926 = vmatpush.bf16.msra.mxu3 %v3185_v62  ;;  %v2978_v47 = vld [vmem:[#allocation5 + $0x1d0] sm:$0xf0] }
  0x2e   :  { %v3168_v2 = vld [vmem:[#allocation5 + $0x340] sm:$0xf]  ;;  %v4136_v3 = vld [vmem:[#allocation5 + $0x34c] sm:$0xf0]  ;;  %v3041_v6 = vor.u32 %v4104_v1, %v3040_v0  ;;  %885 = vmatpush.bf16.msra.mxu0 %v2785_v4  ;;  %v4118_v48 = vld [vmem:[#allocation5 + $0x2c4] sm:$0xf]  ;;  %v2981_v53 = vor.u32 %v4086_v45, %v2978_v47 }
  0x2f   :  { %v2768_v7 = vld [vmem:[#allocation5 + $0x20] sm:$0xf]  ;;  %v4036_v8 = vld [vmem:[#allocation5 + $0x2c] sm:$0xf0]  ;;  %v3169_v10 = vor.u32 %v4136_v3, %v3168_v2  ;;  %899 = vmatpush.bf16.msra.mxu1 %v2913_v5  ;;  %v3106_v49 = vld [vmem:[#allocation5 + $0x2d0] sm:$0xf0] }
  0x30   :  { %v2896_v9 = vld [vmem:[#allocation5 + $0x120] sm:$0xf]  ;;  %v4068_v11 = vld [vmem:[#allocation5 + $0x12c] sm:$0xf0]  ;;  %v2769_v16 = vor.u32 %v4036_v8, %v2768_v7  ;;  %913 = vmatpush.bf16.msra.mxu2 %v3041_v6  ;;  %v4150_v50 = vld [vmem:[#allocation5 + $0x3c4] sm:$0xf]  ;;  %v3109_v54 = vor.u32 %v4118_v48, %v3106_v49 }
  0x31   :  { %v3024_v12 = vld [vmem:[#allocation5 + $0x220] sm:$0xf]  ;;  %v4100_v13 = vld [vmem:[#allocation5 + $0x22c] sm:$0xf0]  ;;  %v2897_v19 = vor.u32 %v4068_v11, %v2896_v9  ;;  %927 = vmatpush.bf16.msra.mxu3 %v3169_v10  ;;  %v3234_v51 = vld [vmem:[#allocation5 + $0x3d0] sm:$0xf0] }
  0x32   :  { %v3152_v14 = vld [vmem:[#allocation5 + $0x320] sm:$0xf]  ;;  %v4132_v15 = vld [vmem:[#allocation5 + $0x32c] sm:$0xf0]  ;;  %v3025_v20 = vor.u32 %v4100_v13, %v3024_v12  ;;  %886 = vmatpush.bf16.msra.mxu0 %v2769_v16  ;;  %v4050_v55 = vld [vmem:[#allocation5 + $0xa4] sm:$0xf]  ;;  %v3237_v58 = vor.u32 %v4150_v50, %v3234_v51 }
  0x33   :  { %v2752_v17 = vld [vmem:[#allocation5] sm:$0xf]  ;;  %v4032_v18 = vld [vmem:[#allocation5 + $0xc] sm:$0xf0]  ;;  %v3153_v24 = vor.u32 %v4132_v15, %v3152_v14  ;;  %900 = vmatpush.bf16.msra.mxu1 %v2897_v19  ;;  %v2834_v56 = vld [vmem:[#allocation5 + $0xb0] sm:$0xf0] }
  0x34   :  { %v2880_v21 = vld [vmem:[#allocation5 + $0x100] sm:$0xf]  ;;  %v4064_v22 = vld [vmem:[#allocation5 + $0x10c] sm:$0xf0]  ;;  %v2753_v31 = vor.u32 %v4032_v18, %v2752_v17  ;;  %914 = vmatpush.bf16.msra.mxu2 %v3025_v20  ;;  %v4082_v57 = vld [vmem:[#allocation5 + $0x1a4] sm:$0xf]  ;;  %v2837_v1 = vor.u32 %v4050_v55, %v2834_v56 }
  0x35   :  { %v3008_v23 = vld [vmem:[#allocation5 + $0x200] sm:$0xf]  ;;  %v4096_v25 = vld [vmem:[#allocation5 + $0x20c] sm:$0xf0]  ;;  %v2881_v35 = vor.u32 %v4064_v22, %v2880_v21  ;;  %928 = vmatpush.bf16.msra.mxu3 %v3153_v24  ;;  %v2962_v59 = vld [vmem:[#allocation5 + $0x1b0] sm:$0xf0] }
  0x36   :  { %v3136_v26 = vld [vmem:[#allocation5 + $0x300] sm:$0xf]  ;;  %v4128_v27 = vld [vmem:[#allocation5 + $0x30c] sm:$0xf0]  ;;  %v3009_v36 = vor.u32 %v4096_v25, %v3008_v23  ;;  %887 = vmatpush.bf16.msra.mxu0 %v2753_v31  ;;  %v4114_v60 = vld [vmem:[#allocation5 + $0x2a4] sm:$0xf]  ;;  %v2965_v5 = vor.u32 %v4082_v57, %v2962_v59 }
  0x37   :  { %v3137_v39 = vor.u32 %v4128_v27, %v3136_v26  ;;  %901 = vmatpush.bf16.msra.mxu1 %v2881_v35  ;;  %v3090_v61 = vld [vmem:[#allocation5 + $0x2b0] sm:$0xf0]  ;;  %v4146_v62 = vld [vmem:[#allocation5 + $0x3a4] sm:$0xf]  ;;  %v103_v9 = vld [vmem:[#allocation2 + $0x18] sm:$0xff] }
  0x38   :  { %915 = vmatpush.bf16.msra.mxu2 %v3009_v36  ;;  %v3218_v63 = vld [vmem:[#allocation5 + $0x3b0] sm:$0xf0]  ;;  %v4046_v0 = vld [vmem:[#allocation5 + $0x84] sm:$0xf]  ;;  %v3093_v6 = vor.u32 %v4114_v60, %v3090_v61  ;;  %v107_v10 = vld [vmem:[#allocation2 + $0x38] sm:$0xff] }
  0x39   :  { %929 = vmatpush.bf16.msra.mxu3 %v3137_v39  ;;  %v2818_v2 = vld [vmem:[#allocation5 + $0x90] sm:$0xf0]  ;;  %v4078_v7 = vld [vmem:[#allocation5 + $0x184] sm:$0xf]  ;;  %v3221_v11 = vor.u32 %v4146_v62, %v3218_v63  ;;  %v4614_v15 = vpack.c.bf16 %v107_v10, %v103_v9  ;;  %v101_v27 = vld [vmem:[#allocation2 + $0x8] sm:$0xff] }
  0x3a   :  { %936 = vmatpush.bf16.msrb.mxu0 %v2869_v40  ;;  %v102_v3 = vld [vmem:[#allocation2 + $0x10] sm:$0xff]  ;;  %v4110_v13 = vld [vmem:[#allocation5 + $0x284] sm:$0xf]  ;;  %v2821_v19 = vor.u32 %v4046_v0, %v2818_v2  ;;  %v105_v28 = vld [vmem:[#allocation2 + $0x28] sm:$0xff] }
  0x3b   :  { %950 = vmatpush.bf16.msrb.mxu1 %v2997_v41  ;;  %v106_v4 = vld [vmem:[#allocation2 + $0x30] sm:$0xff]  ;;  %v4142_v16 = vld [vmem:[#allocation5 + $0x384] sm:$0xf]  ;;  %v4620_v33 = vpack.c.bf16 %v105_v28, %v101_v27  ;;  %v2872_v9 = vld [vmem:[#allocation5 + $0xe8] sm:$0xf] }
  0x3c   :  { %964 = vmatpush.bf16.msrb.mxu2 %v3125_v42  ;;  %v4612_v8 = vpack.c.bf16 %v106_v4, %v102_v3  ;;  %v2946_v12 = vld [vmem:[#allocation5 + $0x190] sm:$0xf0]  ;;  %v4042_v18 = vld [vmem:[#allocation5 + $0x64] sm:$0xf]  ;;  %930 = vmatmul.bf16.vlgmr.msra.gmra.mxu3 %v4614_v15  ;;  %v4061_v10 = vld [vmem:[#allocation5 + $0xf4] sm:$0xf0] }
  0x3d   :  { %978 = vmatpush.bf16.msrb.mxu3 %v3253_v46  ;;  %v3074_v14 = vld [vmem:[#allocation5 + $0x290] sm:$0xf0]  ;;  %v100_v21 = vld [vmem:[#allocation2] sm:$0xff]  ;;  %v2949_v23 = vor.u32 %v4078_v7, %v2946_v12  ;;  %902 = vmatmul.bf16.vlgmr.msra.gmra.mxu1 %v4620_v33  ;;  %v4057_v27 = vld [vmem:[#allocation5 + $0xd4] sm:$0xf0] }
  0x3e   :  { %937 = vmatpush.bf16.msrb.mxu0 %v2853_v52  ;;  %v3202_v17 = vld [vmem:[#allocation5 + $0x390] sm:$0xf0]  ;;  %916 = vmatmul.bf16.vlgmr.msra.gmra.mxu2 %v4612_v8  ;;  %v104_v22 = vld [vmem:[#allocation2 + $0x20] sm:$0xff]  ;;  %v3077_v24 = vor.u32 %v4110_v13, %v3074_v14  ;;  %v4093_v13 = vld [vmem:[#allocation5 + $0x1f4] sm:$0xf0] }
  0x3f   :  { %951 = vmatpush.bf16.msrb.mxu1 %v2981_v53  ;;  %v2802_v20 = vld [vmem:[#allocation5 + $0x70] sm:$0xf0]  ;;  %v4074_v25 = vld [vmem:[#allocation5 + $0x164] sm:$0xf]  ;;  %v4618_v26 = vpack.c.bf16 %v104_v22, %v100_v21  ;;  %v3205_v29 = vor.u32 %v4142_v16, %v3202_v17  ;;  %v3128_v14 = vld [vmem:[#allocation5 + $0x2e8] sm:$0xf]  ;;  %v2873_v22 = vor.u32 %v4061_v10, %v2872_v9 }
  0x40   :  { %965 = vmatpush.bf16.msrb.mxu2 %v3109_v54  ;;  %v2930_v30 = vld [vmem:[#allocation5 + $0x170] sm:$0xf0]  ;;  %v4106_v31 = vld [vmem:[#allocation5 + $0x264] sm:$0xf]  ;;  %v2805_v36 = vor.u32 %v4042_v18, %v2802_v20  ;;  %v4125_v16 = vld [vmem:[#allocation5 + $0x2f4] sm:$0xf0] }
  0x41   :  { %979 = vmatpush.bf16.msrb.mxu3 %v3237_v58  ;;  %v3058_v32 = vld [vmem:[#allocation5 + $0x270] sm:$0xf0]  ;;  %v4138_v34 = vld [vmem:[#allocation5 + $0x364] sm:$0xf]  ;;  %888 = vmatmul.bf16.vlgmr.msra.gmra.mxu0 %v4618_v26  ;;  %v2933_v37 = vor.u32 %v4074_v25, %v2930_v30  ;;  %v4157_v20 = vld [vmem:[#allocation5 + $0x3f4] sm:$0xf0] }
  0x42   :  { %938 = vmatpush.bf16.msrb.mxu0 %v2837_v1  ;;  %v3186_v35 = vld [vmem:[#allocation5 + $0x370] sm:$0xf0]  ;;  %v3061_v38 = vor.u32 %v4106_v31, %v3058_v32  ;;  %v4038_v39 = vld [vmem:[#allocation5 + $0x44] sm:$0xf]  ;;  %v2856_v25 = vld [vmem:[#allocation5 + $0xc8] sm:$0xf] }
  0x43   :  { %952 = vmatpush.bf16.msrb.mxu1 %v2965_v5  ;;  %v2786_v40 = vld [vmem:[#allocation5 + $0x50] sm:$0xf0]  ;;  %v4070_v41 = vld [vmem:[#allocation5 + $0x144] sm:$0xf]  ;;  %v3189_v42 = vor.u32 %v4138_v34, %v3186_v35  ;;  %v2984_v28 = vld [vmem:[#allocation5 + $0x1c8] sm:$0xf] }
  0x44   :  { %966 = vmatpush.bf16.msrb.mxu2 %v3093_v6  ;;  %v2914_v43 = vld [vmem:[#allocation5 + $0x150] sm:$0xf0]  ;;  %v4102_v44 = vld [vmem:[#allocation5 + $0x244] sm:$0xf]  ;;  %v2789_v48 = vor.u32 %v4038_v39, %v2786_v40  ;;  %v4089_v30 = vld [vmem:[#allocation5 + $0x1d4] sm:$0xf0] }
  0x45   :  { %980 = vmatpush.bf16.msrb.mxu3 %v3221_v11  ;;  %v3042_v45 = vld [vmem:[#allocation5 + $0x250] sm:$0xf0]  ;;  %v4134_v46 = vld [vmem:[#allocation5 + $0x344] sm:$0xf]  ;;  %v2917_v49 = vor.u32 %v4070_v41, %v2914_v43  ;;  %v3000_v11 = vld [vmem:[#allocation5 + $0x1e8] sm:$0xf] }
  0x46   :  { %939 = vmatpush.bf16.msrb.mxu0 %v2821_v19  ;;  %v3170_v47 = vld [vmem:[#allocation5 + $0x350] sm:$0xf0]  ;;  %v3045_v50 = vor.u32 %v4102_v44, %v3042_v45  ;;  %v4034_v51 = vld [vmem:[#allocation5 + $0x24] sm:$0xf]  ;;  %v3256_v19 = vld [vmem:[#allocation5 + $0x3e8] sm:$0xf] }
  0x47   :  { %953 = vmatpush.bf16.msrb.mxu1 %v2949_v23  ;;  %v2770_v52 = vld [vmem:[#allocation5 + $0x30] sm:$0xf0]  ;;  %v4066_v53 = vld [vmem:[#allocation5 + $0x124] sm:$0xf]  ;;  %v3173_v54 = vor.u32 %v4134_v46, %v3170_v47  ;;  %v3001_v23 = vor.u32 %v4093_v13, %v3000_v11  ;;  %v3112_v31 = vld [vmem:[#allocation5 + $0x2c8] sm:$0xf] }
  0x48   :  { %967 = vmatpush.bf16.msrb.mxu2 %v3077_v24  ;;  %v2898_v55 = vld [vmem:[#allocation5 + $0x130] sm:$0xf0]  ;;  %v4098_v56 = vld [vmem:[#allocation5 + $0x224] sm:$0xf]  ;;  %v2773_v60 = vor.u32 %v4034_v51, %v2770_v52  ;;  %v3129_v24 = vor.u32 %v4125_v16, %v3128_v14  ;;  %v4121_v32 = vld [vmem:[#allocation5 + $0x2d4] sm:$0xf0] }
  0x49   :  { %981 = vmatpush.bf16.msrb.mxu3 %v3205_v29  ;;  %v3026_v57 = vld [vmem:[#allocation5 + $0x230] sm:$0xf0]  ;;  %v4130_v58 = vld [vmem:[#allocation5 + $0x324] sm:$0xf]  ;;  %v2901_v63 = vor.u32 %v4066_v53, %v2898_v55  ;;  %v3257_v29 = vor.u32 %v4157_v20, %v3256_v19  ;;  %v3240_v34 = vld [vmem:[#allocation5 + $0x3c8] sm:$0xf] }
  0x4a   :  { %940 = vmatpush.bf16.msrb.mxu0 %v2805_v36  ;;  %v3154_v59 = vld [vmem:[#allocation5 + $0x330] sm:$0xf0]  ;;  %v4030_v61 = vld [vmem:[#allocation5 + $0x4] sm:$0xf]  ;;  %v3029_v0 = vor.u32 %v4098_v56, %v3026_v57  ;;  %v4153_v35 = vld [vmem:[#allocation5 + $0x3d4] sm:$0xf0]  ;;  %v2857_v36 = vor.u32 %v4057_v27, %v2856_v25 }
  0x4b   :  { %954 = vmatpush.bf16.msrb.mxu1 %v2933_v37  ;;  %v2754_v62 = vld [vmem:[#allocation5 + $0x10] sm:$0xf0]  ;;  %v4062_v1 = vld [vmem:[#allocation5 + $0x104] sm:$0xf]  ;;  %v3157_v4 = vor.u32 %v4130_v58, %v3154_v59  ;;  %v2985_v37 = vor.u32 %v4089_v30, %v2984_v28  ;;  %v2840_v39 = vld [vmem:[#allocation5 + $0xa8] sm:$0xf] }
  0x4c   :  { %968 = vmatpush.bf16.msrb.mxu2 %v3061_v38  ;;  %v2882_v2 = vld [vmem:[#allocation5 + $0x110] sm:$0xf0]  ;;  %v4094_v3 = vld [vmem:[#allocation5 + $0x204] sm:$0xf]  ;;  %v2757_v12 = vor.u32 %v4030_v61, %v2754_v62  ;;  %v3113_v38 = vor.u32 %v4121_v32, %v3112_v31  ;;  %v4053_v40 = vld [vmem:[#allocation5 + $0xb4] sm:$0xf0] }
  0x4d   :  { %982 = vmatpush.bf16.msrb.mxu3 %v3189_v42  ;;  %v3010_v5 = vld [vmem:[#allocation5 + $0x210] sm:$0xf0]  ;;  %v4126_v6 = vld [vmem:[#allocation5 + $0x304] sm:$0xf]  ;;  %v2885_v17 = vor.u32 %v4062_v1, %v2882_v2  ;;  %v2968_v41 = vld [vmem:[#allocation5 + $0x1a8] sm:$0xf]  ;;  %v3241_v42 = vor.u32 %v4153_v35, %v3240_v34 }
  0x4e   :  { %941 = vmatpush.bf16.msrb.mxu0 %v2789_v48  ;;  %v3138_v7 = vld [vmem:[#allocation5 + $0x310] sm:$0xf0]  ;;  %v3013_v18 = vor.u32 %v4094_v3, %v3010_v5  ;;  %v4085_v43 = vld [vmem:[#allocation5 + $0x1b4] sm:$0xf0]  ;;  %v3096_v44 = vld [vmem:[#allocation5 + $0x2a8] sm:$0xf]  ;;  %v2841_v48 = vor.u32 %v4053_v40, %v2840_v39 }
  0x4f   :  { %955 = vmatpush.bf16.msrb.mxu1 %v2917_v49  ;;  %v3141_v21 = vor.u32 %v4126_v6, %v3138_v7  ;;  %v4117_v45 = vld [vmem:[#allocation5 + $0x2b4] sm:$0xf0]  ;;  %v3224_v46 = vld [vmem:[#allocation5 + $0x3a8] sm:$0xf]  ;;  %v2969_v49 = vor.u32 %v4085_v43, %v2968_v41 }
  0x50   :  { %969 = vmatpush.bf16.msrb.mxu2 %v3045_v50  ;;  %v4149_v47 = vld [vmem:[#allocation5 + $0x3b4] sm:$0xf0]  ;;  %v3097_v50 = vor.u32 %v4117_v45, %v3096_v44  ;;  %v2824_v51 = vld [vmem:[#allocation5 + $0x88] sm:$0xf] }
  0x51   :  { %983 = vmatpush.bf16.msrb.mxu3 %v3173_v54  ;;  %v4049_v52 = vld [vmem:[#allocation5 + $0x94] sm:$0xf0]  ;;  %v2952_v53 = vld [vmem:[#allocation5 + $0x188] sm:$0xf]  ;;  %v3225_v54 = vor.u32 %v4149_v47, %v3224_v46 }
  0x52   :  { %942 = vmatpush.bf16.msrb.mxu0 %v2773_v60  ;;  %v4081_v55 = vld [vmem:[#allocation5 + $0x194] sm:$0xf0]  ;;  %v3080_v56 = vld [vmem:[#allocation5 + $0x288] sm:$0xf]  ;;  %v2825_v60 = vor.u32 %v4049_v52, %v2824_v51  ;;  %v3002_v52 = vld [vmem:[#allocation5 + $0x1f8] sm:$0xf0] }
  0x53   :  { %956 = vmatpush.bf16.msrb.mxu1 %v2901_v63  ;;  %v4113_v57 = vld [vmem:[#allocation5 + $0x294] sm:$0xf0]  ;;  %v3208_v58 = vld [vmem:[#allocation5 + $0x388] sm:$0xf]  ;;  %v2953_v61 = vor.u32 %v4081_v55, %v2952_v53  ;;  %v4123_v53 = vld [vmem:[#allocation5 + $0x2ec] sm:$0xf] }
  0x54   :  { %970 = vmatpush.bf16.msrb.mxu2 %v3029_v0  ;;  %v4145_v59 = vld [vmem:[#allocation5 + $0x394] sm:$0xf0]  ;;  %v3081_v62 = vor.u32 %v4113_v57, %v3080_v56  ;;  %v2808_v63 = vld [vmem:[#allocation5 + $0x68] sm:$0xf]  ;;  %v4155_v57 = vld [vmem:[#allocation5 + $0x3ec] sm:$0xf] }
  0x55   :  { %984 = vmatpush.bf16.msrb.mxu3 %v3157_v4  ;;  %v4045_v0 = vld [vmem:[#allocation5 + $0x74] sm:$0xf0]  ;;  %v2936_v1 = vld [vmem:[#allocation5 + $0x168] sm:$0xf]  ;;  %v3209_v2 = vor.u32 %v4145_v59, %v3208_v58  ;;  %v3258_v58 = vld [vmem:[#allocation5 + $0x3f8] sm:$0xf0] }
  0x56   :  { %943 = vmatpush.bf16.msrb.mxu0 %v2757_v12  ;;  %v4077_v3 = vld [vmem:[#allocation5 + $0x174] sm:$0xf0]  ;;  %v3064_v4 = vld [vmem:[#allocation5 + $0x268] sm:$0xf]  ;;  %v2809_v9 = vor.u32 %v4045_v0, %v2808_v63  ;;  %v4055_v63 = vld [vmem:[#allocation5 + $0xcc] sm:$0xf] }
  0x57   :  { %957 = vmatpush.bf16.msrb.mxu1 %v2885_v17  ;;  %v4109_v5 = vld [vmem:[#allocation5 + $0x274] sm:$0xf0]  ;;  %v3192_v6 = vld [vmem:[#allocation5 + $0x368] sm:$0xf]  ;;  %v2937_v10 = vor.u32 %v4077_v3, %v2936_v1  ;;  %v2858_v0 = vld [vmem:[#allocation5 + $0xd8] sm:$0xf0] }
  0x58   :  { %971 = vmatpush.bf16.msrb.mxu2 %v3013_v18  ;;  %v4141_v7 = vld [vmem:[#allocation5 + $0x374] sm:$0xf0]  ;;  %v3065_v11 = vor.u32 %v4109_v5, %v3064_v4  ;;  %v2792_v12 = vld [vmem:[#allocation5 + $0x48] sm:$0xf]  ;;  %v4087_v1 = vld [vmem:[#allocation5 + $0x1cc] sm:$0xf] }
  0x59   :  { %985 = vmatpush.bf16.msrb.mxu3 %v3141_v21  ;;  %944 = vmatmul.bf16.vlgmr.msrb.gmra.mxu0 %v4618_v26  ;;  %v4041_v13 = vld [vmem:[#allocation5 + $0x54] sm:$0xf0]  ;;  %v2920_v14 = vld [vmem:[#allocation5 + $0x148] sm:$0xf]  ;;  %v3193_v16 = vor.u32 %v4141_v7, %v3192_v6  ;;  %v2986_v3 = vld [vmem:[#allocation5 + $0x1d8] sm:$0xf0] }
  0x5a   :  { %992 = vmatpush.bf16.msra.mxu0 %v2873_v22  ;;  %958 = vmatmul.bf16.vlgmr.msrb.gmra.mxu1 %v4620_v33  ;;  %v4073_v17 = vld [vmem:[#allocation5 + $0x154] sm:$0xf0]  ;;  %v3048_v18 = vld [vmem:[#allocation5 + $0x248] sm:$0xf]  ;;  %v2793_v22 = vor.u32 %v4041_v13, %v2792_v12  ;;  %v4119_v4 = vld [vmem:[#allocation5 + $0x2cc] sm:$0xf] }
  0x5b   :  { %1006 = vmatpush.bf16.msra.mxu1 %v3001_v23  ;;  %972 = vmatmul.bf16.vlgmr.msrb.gmra.mxu2 %v4612_v8  ;;  %v4105_v19 = vld [vmem:[#allocation5 + $0x254] sm:$0xf0]  ;;  %v3176_v20 = vld [vmem:[#allocation5 + $0x348] sm:$0xf]  ;;  %v2921_v23 = vor.u32 %v4073_v17, %v2920_v14  ;;  %v3114_v5 = vld [vmem:[#allocation5 + $0x2d8] sm:$0xf0] }
  0x5c   :  { %1020 = vmatpush.bf16.msra.mxu2 %v3129_v24  ;;  %986 = vmatmul.bf16.vlgmr.msrb.gmra.mxu3 %v4614_v15  ;;  %v4137_v21 = vld [vmem:[#allocation5 + $0x354] sm:$0xf0]  ;;  %v3049_v24 = vor.u32 %v4105_v19, %v3048_v18  ;;  %v2776_v25 = vld [vmem:[#allocation5 + $0x28] sm:$0xf]  ;;  %v4151_v6 = vld [vmem:[#allocation5 + $0x3cc] sm:$0xf] }
  0x5d   :  { %1034 = vmatpush.bf16.msra.mxu3 %v3257_v29  ;;  %v4037_v27 = vld [vmem:[#allocation5 + $0x34] sm:$0xf0]  ;;  %v2904_v28 = vld [vmem:[#allocation5 + $0x128] sm:$0xf]  ;;  %v3177_v29 = vor.u32 %v4137_v21, %v3176_v20  ;;  %v3242_v7 = vld [vmem:[#allocation5 + $0x3d8] sm:$0xf0] }
  0x5e   :  { %993 = vmatpush.bf16.msra.mxu0 %v2857_v36  ;;  %v4069_v30 = vld [vmem:[#allocation5 + $0x134] sm:$0xf0]  ;;  %v3032_v31 = vld [vmem:[#allocation5 + $0x228] sm:$0xf]  ;;  %v2777_v36 = vor.u32 %v4037_v27, %v2776_v25  ;;  %v4051_v12 = vld [vmem:[#allocation5 + $0xac] sm:$0xf] }
  0x5f   :  { %1007 = vmatpush.bf16.msra.mxu1 %v2985_v37  ;;  %v4101_v32 = vld [vmem:[#allocation5 + $0x234] sm:$0xf0]  ;;  %v3160_v34 = vld [vmem:[#allocation5 + $0x328] sm:$0xf]  ;;  %v2905_v39 = vor.u32 %v4069_v30, %v2904_v28  ;;  %v2842_v13 = vld [vmem:[#allocation5 + $0xb8] sm:$0xf0] }
  0x60   :  { %1021 = vmatpush.bf16.msra.mxu2 %v3113_v38  ;;  %v4133_v35 = vld [vmem:[#allocation5 + $0x334] sm:$0xf0]  ;;  %v2760_v37 = vld [vmem:[#allocation5 + $0x8] sm:$0xf]  ;;  %v3033_v40 = vor.u32 %v4101_v32, %v3032_v31  ;;  %v4083_v14 = vld [vmem:[#allocation5 + $0x1ac] sm:$0xf] }
  0x61   :  { %1035 = vmatpush.bf16.msra.mxu3 %v3241_v42  ;;  %v4033_v38 = vld [vmem:[#allocation5 + $0x14] sm:$0xf0]  ;;  %v2888_v41 = vld [vmem:[#allocation5 + $0x108] sm:$0xf]  ;;  %v3161_v44 = vor.u32 %v4133_v35, %v3160_v34  ;;  %v2970_v17 = vld [vmem:[#allocation5 + $0x1b8] sm:$0xf0] }
  0x62   :  { %994 = vmatpush.bf16.msra.mxu0 %v2841_v48  ;;  %v4065_v42 = vld [vmem:[#allocation5 + $0x114] sm:$0xf0]  ;;  %v3016_v43 = vld [vmem:[#allocation5 + $0x208] sm:$0xf]  ;;  %v4059_v48 = vld [vmem:[#allocation5 + $0xec] sm:$0xf]  ;;  %v2761_v51 = vor.u32 %v4033_v38, %v2760_v37 }
  0x63   :  { %1008 = vmatpush.bf16.msra.mxu1 %v2969_v49  ;;  %v4097_v45 = vld [vmem:[#allocation5 + $0x214] sm:$0xf0]  ;;  %v3144_v46 = vld [vmem:[#allocation5 + $0x308] sm:$0xf]  ;;  %v2874_v49 = vld [vmem:[#allocation5 + $0xf8] sm:$0xf0]  ;;  %v2889_v55 = vor.u32 %v4065_v42, %v2888_v41 }
  0x64   :  { %1022 = vmatpush.bf16.msra.mxu2 %v3097_v50  ;;  %v4129_v47 = vld [vmem:[#allocation5 + $0x314] sm:$0xf0]  ;;  %v4091_v50 = vld [vmem:[#allocation5 + $0x1ec] sm:$0xf]  ;;  %v3017_v56 = vor.u32 %v4097_v45, %v3016_v43  ;;  %v3098_v19 = vld [vmem:[#allocation5 + $0x2b8] sm:$0xf0] }
  0x65   :  { %1036 = vmatpush.bf16.msra.mxu3 %v3225_v54  ;;  %v3130_v54 = vld [vmem:[#allocation5 + $0x2f8] sm:$0xf0]  ;;  %v3145_v59 = vor.u32 %v4129_v47, %v3144_v46  ;;  %v4115_v18 = vld [vmem:[#allocation5 + $0x2ac] sm:$0xf] }
  0x66   :  { %995 = vmatpush.bf16.msra.mxu0 %v2825_v60  ;;  %v2877_v60 = vor.u32 %v4059_v48, %v2874_v49  ;;  %v4147_v20 = vld [vmem:[#allocation5 + $0x3ac] sm:$0xf]  ;;  %v3226_v21 = vld [vmem:[#allocation5 + $0x3b8] sm:$0xf0] }
  0x67   :  { %1009 = vmatpush.bf16.msra.mxu1 %v2953_v61  ;;  %v3005_v61 = vor.u32 %v4091_v50, %v3002_v52  ;;  %v4047_v25 = vld [vmem:[#allocation5 + $0x8c] sm:$0xf]  ;;  %v2826_v27 = vld [vmem:[#allocation5 + $0x98] sm:$0xf0] }
  0x68   :  { %1023 = vmatpush.bf16.msra.mxu2 %v3081_v62  ;;  %v3133_v62 = vor.u32 %v4123_v53, %v3130_v54  ;;  %v4079_v28 = vld [vmem:[#allocation5 + $0x18c] sm:$0xf]  ;;  %v2954_v30 = vld [vmem:[#allocation5 + $0x198] sm:$0xf0] }
  0x69   :  { %1037 = vmatpush.bf16.msra.mxu3 %v3209_v2  ;;  %v3261_v2 = vor.u32 %v4155_v57, %v3258_v58  ;;  %v4111_v31 = vld [vmem:[#allocation5 + $0x28c] sm:$0xf]  ;;  %v3082_v32 = vld [vmem:[#allocation5 + $0x298] sm:$0xf0]  ;;  %v2957_v37 = vor.u32 %v4079_v28, %v2954_v30 }
  0x6a   :  { %996 = vmatpush.bf16.msra.mxu0 %v2809_v9  ;;  %v2861_v9 = vor.u32 %v4055_v63, %v2858_v0  ;;  %v4143_v34 = vld [vmem:[#allocation5 + $0x38c] sm:$0xf]  ;;  %v3210_v35 = vld [vmem:[#allocation5 + $0x398] sm:$0xf0]  ;;  %v3085_v38 = vor.u32 %v4111_v31, %v3082_v32 }
  0x6b   :  { %1010 = vmatpush.bf16.msra.mxu1 %v2937_v10  ;;  %v2989_v10 = vor.u32 %v4087_v1, %v2986_v3  ;;  %v4075_v41 = vld [vmem:[#allocation5 + $0x16c] sm:$0xf]  ;;  %v3213_v42 = vor.u32 %v4143_v34, %v3210_v35  ;;  %v2938_v43 = vld [vmem:[#allocation5 + $0x178] sm:$0xf0] }
  0x6c   :  { %1024 = vmatpush.bf16.msra.mxu2 %v3065_v11  ;;  %v3117_v11 = vor.u32 %v4119_v4, %v3114_v5  ;;  %v3066_v45 = vld [vmem:[#allocation5 + $0x278] sm:$0xf0]  ;;  %v4139_v46 = vld [vmem:[#allocation5 + $0x36c] sm:$0xf]  ;;  %v2941_v49 = vor.u32 %v4075_v41, %v2938_v43 }
  0x6d   :  { %1038 = vmatpush.bf16.msra.mxu3 %v3193_v16  ;;  %v3245_v16 = vor.u32 %v4151_v6, %v3242_v7  ;;  %v3194_v47 = vld [vmem:[#allocation5 + $0x378] sm:$0xf0]  ;;  %v4071_v53 = vld [vmem:[#allocation5 + $0x14c] sm:$0xf] }
  0x6e   :  { %997 = vmatpush.bf16.msra.mxu0 %v2793_v22  ;;  %v2845_v22 = vor.u32 %v4051_v12, %v2842_v13  ;;  %v2794_v52 = vld [vmem:[#allocation5 + $0x58] sm:$0xf0]  ;;  %v3197_v54 = vor.u32 %v4139_v46, %v3194_v47  ;;  %v4135_v58 = vld [vmem:[#allocation5 + $0x34c] sm:$0xf] }
  0x6f   :  { %1011 = vmatpush.bf16.msra.mxu1 %v2921_v23  ;;  %v2973_v23 = vor.u32 %v4083_v14, %v2970_v17  ;;  %v3050_v57 = vld [vmem:[#allocation5 + $0x258] sm:$0xf0]  ;;  %v4035_v63 = vld [vmem:[#allocation5 + $0x2c] sm:$0xf] }
  0x70   :  { %1025 = vmatpush.bf16.msra.mxu2 %v3049_v24  ;;  %v3101_v24 = vor.u32 %v4115_v18, %v3098_v19  ;;  %v2778_v0 = vld [vmem:[#allocation5 + $0x38] sm:$0xf0]  ;;  %v4067_v1 = vld [vmem:[#allocation5 + $0x12c] sm:$0xf] }
  0x71   :  { %1039 = vmatpush.bf16.msra.mxu3 %v3177_v29  ;;  %v3229_v29 = vor.u32 %v4147_v20, %v3226_v21  ;;  %v2906_v3 = vld [vmem:[#allocation5 + $0x138] sm:$0xf0]  ;;  %v4099_v4 = vld [vmem:[#allocation5 + $0x22c] sm:$0xf] }
  0x72   :  { %998 = vmatpush.bf16.msra.mxu0 %v2777_v36  ;;  %v2829_v36 = vor.u32 %v4047_v25, %v2826_v27  ;;  %v3034_v5 = vld [vmem:[#allocation5 + $0x238] sm:$0xf0]  ;;  %v4131_v6 = vld [vmem:[#allocation5 + $0x32c] sm:$0xf] }
  0x73   :  { %1012 = vmatpush.bf16.msra.mxu1 %v2905_v39  ;;  %v4043_v39 = vld [vmem:[#allocation5 + $0x6c] sm:$0xf]  ;;  %v3162_v7 = vld [vmem:[#allocation5 + $0x338] sm:$0xf0] }
  0x74   :  { %1026 = vmatpush.bf16.msra.mxu2 %v3033_v40  ;;  %v2810_v40 = vld [vmem:[#allocation5 + $0x78] sm:$0xf0]  ;;  %v4031_v12 = vld [vmem:[#allocation5 + $0xc] sm:$0xf] }
  0x75   :  { %1040 = vmatpush.bf16.msra.mxu3 %v3161_v44  ;;  %v4107_v44 = vld [vmem:[#allocation5 + $0x26c] sm:$0xf]  ;;  %v2813_v48 = vor.u32 %v4043_v39, %v2810_v40  ;;  %v2762_v13 = vld [vmem:[#allocation5 + $0x18] sm:$0xf0] }
  0x76   :  { %999 = vmatpush.bf16.msra.mxu0 %v2761_v51  ;;  %v3069_v50 = vor.u32 %v4107_v44, %v3066_v45  ;;  %v4039_v51 = vld [vmem:[#allocation5 + $0x4c] sm:$0xf]  ;;  %v2890_v17 = vld [vmem:[#allocation5 + $0x118] sm:$0xf0] }
  0x77   :  { %1013 = vmatpush.bf16.msra.mxu1 %v2889_v55  ;;  %v2922_v55 = vld [vmem:[#allocation5 + $0x158] sm:$0xf0]  ;;  %v4063_v14 = vld [vmem:[#allocation5 + $0x10c] sm:$0xf] }
  0x78   :  { %1027 = vmatpush.bf16.msra.mxu2 %v3017_v56  ;;  %v4103_v56 = vld [vmem:[#allocation5 + $0x24c] sm:$0xf]  ;;  %v3018_v19 = vld [vmem:[#allocation5 + $0x218] sm:$0xf0] }
  0x79   :  { %1041 = vmatpush.bf16.msra.mxu3 %v3145_v59  ;;  %1000 = vmatmul.bf16.vlgmr.msra.gmra.mxu0 %v4618_v26  ;;  %v3178_v59 = vld [vmem:[#allocation5 + $0x358] sm:$0xf0]  ;;  %v4095_v18 = vld [vmem:[#allocation5 + $0x20c] sm:$0xf] }
  0x7a   :  { %1048 = vmatpush.bf16.msrb.mxu0 %v2877_v60  ;;  %1014 = vmatmul.bf16.vlgmr.msra.gmra.mxu1 %v4620_v33  ;;  %v2797_v60 = vor.u32 %v4039_v51, %v2794_v52  ;;  %v4127_v20 = vld [vmem:[#allocation5 + $0x30c] sm:$0xf]  ;;  %v3146_v21 = vld [vmem:[#allocation5 + $0x318] sm:$0xf0] }
  0x7b   :  { %1062 = vmatpush.bf16.msrb.mxu1 %v3005_v61  ;;  %1028 = vmatmul.bf16.vlgmr.msra.gmra.mxu2 %v4612_v8  ;;  %v2925_v61 = vor.u32 %v4071_v53, %v2922_v55  ;;  %v3149_v25 = vor.u32 %v4127_v20, %v3146_v21 }
  0x7c   :  { %1076 = vmatpush.bf16.msrb.mxu2 %v3133_v62  ;;  %1042 = vmatmul.bf16.vlgmr.msra.gmra.mxu3 %v4614_v15  ;;  %v3053_v62 = vor.u32 %v4103_v56, %v3050_v57 }
  0x7d   :  { %1090 = vmatpush.bf16.msrb.mxu3 %v3261_v2  ;;  %v3181_v2 = vor.u32 %v4135_v58, %v3178_v59 }
  0x7e   :  { %1049 = vmatpush.bf16.msrb.mxu0 %v2861_v9  ;;  %v2781_v9 = vor.u32 %v4035_v63, %v2778_v0 }
  0x7f   :  { %1063 = vmatpush.bf16.msrb.mxu1 %v2989_v10  ;;  %v2909_v10 = vor.u32 %v4067_v1, %v2906_v3 }
  0x80   :  { %1077 = vmatpush.bf16.msrb.mxu2 %v3117_v11  ;;  %v3037_v11 = vor.u32 %v4099_v4, %v3034_v5 }
  0x81   :  { %1091 = vmatpush.bf16.msrb.mxu3 %v3245_v16  ;;  %v3165_v16 = vor.u32 %v4131_v6, %v3162_v7 }
  0x82   :  { %1050 = vmatpush.bf16.msrb.mxu0 %v2845_v22  ;;  %v2765_v22 = vor.u32 %v4031_v12, %v2762_v13 }
  0x83   :  { %1064 = vmatpush.bf16.msrb.mxu1 %v2973_v23  ;;  %v2893_v23 = vor.u32 %v4063_v14, %v2890_v17 }
  0x84   :  { %1078 = vmatpush.bf16.msrb.mxu2 %v3101_v24  ;;  %v3021_v24 = vor.u32 %v4095_v18, %v3018_v19 }
  0x85   :  { %1092 = vmatpush.bf16.msrb.mxu3 %v3229_v29 }
  0x86   :  { %1051 = vmatpush.bf16.msrb.mxu0 %v2829_v36 }
  0x87   :  { %1065 = vmatpush.bf16.msrb.mxu1 %v2957_v37 }
  0x88   :  { %1079 = vmatpush.bf16.msrb.mxu2 %v3085_v38 }
  0x89   :  { %1093 = vmatpush.bf16.msrb.mxu3 %v3213_v42 }
  0x8a   :  { %1052 = vmatpush.bf16.msrb.mxu0 %v2813_v48 }
  0x8b   :  { %1066 = vmatpush.bf16.msrb.mxu1 %v2941_v49 }
  0x8c   :  { %1080 = vmatpush.bf16.msrb.mxu2 %v3069_v50 }
  0x8d   :  { %1094 = vmatpush.bf16.msrb.mxu3 %v3197_v54 }
  0x8e   :  { %1053 = vmatpush.bf16.msrb.mxu0 %v2797_v60 }
  0x8f   :  { %1067 = vmatpush.bf16.msrb.mxu1 %v2925_v61 }
  0x90   :  { %1081 = vmatpush.bf16.msrb.mxu2 %v3053_v62 }
  0x91   :  { %1095 = vmatpush.bf16.msrb.mxu3 %v3181_v2 }
  0x92   :  { %1054 = vmatpush.bf16.msrb.mxu0 %v2781_v9 }
  0x93   :  { %1068 = vmatpush.bf16.msrb.mxu1 %v2909_v10 }
  0x94   :  { %1082 = vmatpush.bf16.msrb.mxu2 %v3037_v11 }
  0x95   :  { %1096 = vmatpush.bf16.msrb.mxu3 %v3165_v16 }
  0x96   :  { %1055 = vmatpush.bf16.msrb.mxu0 %v2765_v22 }
  0x97   :  { %1069 = vmatpush.bf16.msrb.mxu1 %v2893_v23 }
  0x98   :  { %1083 = vmatpush.bf16.msrb.mxu2 %v3021_v24 }
  0x99   :  { %1097 = vmatpush.bf16.msrb.mxu3 %v3149_v25  ;;  %1056 = vmatmul.bf16.vlgmr.msrb.gmra.mxu0 %v4618_v26 }
  0x9a   :  { %1070 = vmatmul.bf16.vlgmr.msrb.gmra.mxu1 %v4620_v33 }
  0x9b   :  { %1084 = vmatmul.bf16.vlgmr.msrb.gmra.mxu2 %v4612_v8 }
  0x9c   :  { %1098 = vmatmul.bf16.vlgmr.msrb.gmra.mxu3 %v4614_v15 }
  0xba   :  { %v903_v28 = vpop.f32.mrf.mxu1 }
  0xbe   :  { %v889_v27 = vpop.f32.mrf.mxu0 }
  0xbf   :  { %v931_v30 = vpop.f32.mrf.mxu3  ;;  %v904_v48 = vadd.f32 %v903_v28, %v889_v27 }
  0xc1   :  { %v917_v29 = vpop.f32.mrf.mxu2 }
  0xc2   :  { %v905_v32 = vpop.f32.mrf.mxu1  ;;  %v918_v53 = vadd.f32 %v917_v29, %v904_v48 }
  0xc4   :  { %v932_v58 = vadd.f32 %v931_v30, %v918_v53 }
  0xc6   :  { %v891_v31 = vpop.f32.mrf.mxu0  ;;  %v1104_v62 = vmul.f32 %v932_v58, %v932_v58 }
  0xc7   :  { %v933_v35 = vpop.f32.mrf.mxu3  ;;  %v906_v49 = vadd.f32 %v905_v32, %v891_v31 }
  0xc9   :  { %v919_v34 = vpop.f32.mrf.mxu2 }
  0xca   :  { %v920_v55 = vadd.f32 %v919_v34, %v906_v49 }
  0xcc   :  { %v934_v59 = vadd.f32 %v933_v35, %v920_v55 }
  0xce   :  { %v1106_v63 = vmul.f32 %v934_v59, %v934_v59 }
  0xd6   :  { %v945_v36 = vpop.f32.mrf.mxu0 }
  0xd7   :  { %v959_v37 = vpop.f32.mrf.mxu1 }
  0xd8   :  { %v960_v2 = vadd.f32 %v959_v37, %v945_v36 }
  0xde   :  { %v973_v38 = vpop.f32.mrf.mxu2  ;;  %v947_v40 = vpop.f32.mrf.mxu0 }
  0xdf   :  { %v987_v39 = vpop.f32.mrf.mxu3  ;;  %v961_v26 = vpop.f32.mrf.mxu1  ;;  %v974_v5 = vadd.f32 %v973_v38, %v960_v2 }
  0xe0   :  { %v962_v12 = vadd.f32 %v961_v26, %v947_v40 }
  0xe1   :  { %v988_v11 = vadd.f32 %v987_v39, %v974_v5 }
  0xe3   :  { %v1105_v21 = vmul.f32 %v988_v11, %v988_v11 }
  0xe6   :  { %v975_v41 = vpop.f32.mrf.mxu2 }
  0xe7   :  { %v989_v33 = vpop.f32.mrf.mxu3  ;;  %v976_v22 = vadd.f32 %v975_v41, %v962_v12 }
  0xe9   :  { %v990_v30 = vadd.f32 %v989_v33, %v976_v22  ;;  %v4188_v22 = vld [vmem:[#allocation7 + $0xec] sm:$0xf0] }
  0xeb   :  { %v1107_v37 = vmul.f32 %v990_v30, %v990_v30 }
  0xf6   :  { %v1001_v42 = vpop.f32.mrf.mxu0 }
  0xf7   :  { %v1015_v8 = vpop.f32.mrf.mxu1 }
  0xf8   :  { %v1016_v45 = vadd.f32 %v1015_v8, %v1001_v42 }
  0xfe   :  { %v1029_v43 = vpop.f32.mrf.mxu2  ;;  %v1003_v44 = vpop.f32.mrf.mxu0 }
  0xff   :  { %v1043_v15 = vpop.f32.mrf.mxu3  ;;  %v1017_v46 = vpop.f32.mrf.mxu1  ;;  %v1030_v50 = vadd.f32 %v1029_v43, %v1016_v45 }
 0x100   :  { %v1018_v47 = vadd.f32 %v1017_v46, %v1003_v44 }
 0x101   :  { %v1044_v56 = vadd.f32 %v1043_v15, %v1030_v50 }
 0x103   :  { %v1108_v60 = vmul.f32 %v1044_v56, %v1044_v56 }
 0x105   :  { %v4636_v0 = vadd.f32 %v1108_v60, %v1104_v62 }
 0x106   :  { %v1031_v51 = vpop.f32.mrf.mxu2 }
 0x107   :  { %v1032_v52 = vadd.f32 %v1031_v51, %v1018_v47  ;;  %v1045_v54 = vpop.f32.mrf.mxu3  ;;  %4371 = vrsqrt.f32 %v4636_v0  ;;  %vm1123_vm0 = vcmp.eq.f32.partialorder %v4636_v0, inf  ;;  %v1126_v50 = vand.u32 2147483648, %v4636_v0 }
 0x108   :  { %vm1125_vm4 = vcmp.eq.f32.partialorder %v4636_v0, 0.0 }
 0x109   :  { %v1046_v57 = vadd.f32 %v1045_v54, %v1032_v52 }
 0x10b   :  { %v1110_v61 = vmul.f32 %v1046_v57, %v1046_v57 }
 0x10d   :  { %v4638_v1 = vadd.f32 %v1110_v61, %v1106_v63  ;;  %v4372_v7 = vpop.eup %4371 }
 0x10e   :  { %v1117_v17 = vmul.f32 %v4372_v7, %v4636_v0 }
 0x10f   :  { %4373 = vrsqrt.f32 %v4638_v1  ;;  %vm1147_vm2 = vcmp.eq.f32.partialorder %v4638_v1, inf  ;;  %v1150_v59 = vand.u32 2147483648, %v4638_v1  ;;  %vm1149_vm5 = vcmp.eq.f32.partialorder %v4638_v1, 0.0 }
 0x110   :  { %v1118_v27 = vmul.f32 %v4372_v7, %v1117_v17 }
 0x112   :  { %v1119_v35 = vmul.f32 0.5, %v1118_v27  ;;  %v4186_v27 = vld [vmem:[#allocation7 + $0xe4] sm:$0xf] }
 0x114   :  { %v1120_v26 = vsub.f32 1.5, %v1119_v35 }
 0x115   :  { %v4374_v10 = vpop.eup %4373 }
 0x116   :  { %v1057_v3 = vpop.f32.mrf.mxu0  ;;  %v1141_v20 = vmul.f32 %v4374_v10, %v4638_v1  ;;  %v1121_v43 = vmul.f32 %v4372_v7, %v1120_v26  ;;  %v4182_v26 = vld [vmem:[#allocation7 + $0xc4] sm:$0xf] }
 0x117   :  { %v1071_v4 = vpop.f32.mrf.mxu1 }
 0x118   :  { %v1072_v6 = vadd.f32 %v1071_v4, %v1057_v3  ;;  %v1142_v29 = vmul.f32 %v4374_v10, %v1141_v20  ;;  %v1122_v46 = vmul.f32 %v1121_v43, %v4636_v0  ;;  %v3490_v43 = vld [vmem:[#allocation7 + $0x1d0] sm:$0xf0] }
 0x11a   :  { %v1143_v36 = vmul.f32 0.5, %v1142_v29  ;;  %v1124_v53 = vsel %vm1123_vm0, %v4636_v0, %v1122_v46  ;;  %v4212_v46 = vld [vmem:[#allocation7 + $0x1ac] sm:$0xf0] }
 0x11b   :  { %v1127_v60 = vsel %vm1125_vm4, %v1126_v50, %v1124_v53  ;;  %v4210_v50 = vld [vmem:[#allocation7 + $0x1a4] sm:$0xf] }
 0x11c   :  { %v1144_v41 = vsub.f32 1.5, %v1143_v36  ;;  %v1164_v3 = vadd.f32 1e-05, %v1127_v60  ;;  %v4184_v36 = vld [vmem:[#allocation7 + $0xcc] sm:$0xf0] }
 0x11d   :  { %v3330_v60 = vld [vmem:[#allocation7 + $0x90] sm:$0xf0] }
 0x11e   :  { %v1085_v9 = vpop.f32.mrf.mxu2  ;;  %v1059_v18 = vpop.f32.mrf.mxu0  ;;  %v1145_v44 = vmul.f32 %v4374_v10, %v1144_v41  ;;  %v4214_v41 = vld [vmem:[#allocation7 + $0x1c4] sm:$0xf] }
 0x11f   :  { %v1086_v13 = vadd.f32 %v1085_v9, %v1072_v6  ;;  %v1099_v14 = vpop.f32.mrf.mxu3  ;;  %v1073_v19 = vpop.f32.mrf.mxu1 }
 0x120   :  { %v1074_v25 = vadd.f32 %v1073_v19, %v1059_v18  ;;  %v1146_v48 = vmul.f32 %v1145_v44, %v4638_v1  ;;  %v4180_v44 = vld [vmem:[#allocation7 + $0xac] sm:$0xf0] }
 0x121   :  { %v1100_v16 = vadd.f32 %v1099_v14, %v1086_v13 }
 0x122   :  { %v1148_v56 = vsel %vm1147_vm2, %v4638_v1, %v1146_v48 }
 0x123   :  { %v1109_v23 = vmul.f32 %v1100_v16, %v1100_v16  ;;  %v1151_v62 = vsel %vm1149_vm5, %v1150_v59, %v1148_v56  ;;  %v3456_v56 = vld [vmem:[#allocation7 + $0x180] sm:$0xf]  ;;  %v4174_v59 = vld [vmem:[#allocation7 + $0x84] sm:$0xf] }
 0x124   :  { %v1166_v5 = vadd.f32 1e-05, %v1151_v62  ;;  %v3458_v62 = vld [vmem:[#allocation7 + $0x190] sm:$0xf0] }
 0x125   :  { %v1113_v24 = vadd.f32 %v1109_v23, %v1105_v21  ;;  %v3376_v21 = vld [vmem:[#allocation7 + $0xe0] sm:$0xf] }
 0x126   :  { %v1087_v28 = vpop.f32.mrf.mxu2  ;;  %v3504_v23 = vld [vmem:[#allocation7 + $0x1e0] sm:$0xf] }
 0x127   :  { %4375 = vrsqrt.f32 %v1113_v24  ;;  %v1088_v31 = vadd.f32 %v1087_v28, %v1074_v25  ;;  %v1101_v32 = vpop.f32.mrf.mxu3  ;;  %vm1135_vm1 = vcmp.eq.f32.partialorder %v1113_v24, inf  ;;  %v1138_v54 = vand.u32 2147483648, %v1113_v24  ;;  %v4220_v25 = vld [vmem:[#allocation7 + $0x1ec] sm:$0xf0]  ;;  %v3378_v28 = vld [vmem:[#allocation7 + $0xf0] sm:$0xf0] }
 0x128   :  { %vm1137_vm3 = vcmp.eq.f32.partialorder %v1113_v24, 0.0  ;;  %v3505_v29 = vor.u32 %v4220_v25, %v3504_v23  ;;  %v3381_v30 = vor.u32 %v4186_v27, %v3378_v28  ;;  %v4166_v23 = vld [vmem:[#allocation7 + $0x44] sm:$0xf]  ;;  %v3426_v27 = vld [vmem:[#allocation7 + $0x150] sm:$0xf0] }
 0x129   :  { %v1102_v34 = vadd.f32 %v1101_v32, %v1088_v31  ;;  %v4218_v31 = vld [vmem:[#allocation7 + $0x1e4] sm:$0xf]  ;;  %v3506_v32 = vld [vmem:[#allocation7 + $0x1f0] sm:$0xf0] }
 0x12a   :  { %v3509_v35 = vor.u32 %v4218_v31, %v3506_v32  ;;  %1601 = vmatpush.bf16.msra.mxu1 %v3505_v29  ;;  %1615 = vmatpush.bf16.msra.mxu2 %v3381_v30  ;;  %v4198_v25 = vld [vmem:[#allocation7 + $0x144] sm:$0xf]  ;;  %v3280_v31 = vld [vmem:[#allocation7 + $0x20] sm:$0xf]  ;;  %v4164_v32 = vld [vmem:[#allocation7 + $0x2c] sm:$0xf0] }
 0x12b   :  { %v1111_v38 = vmul.f32 %v1102_v34, %v1102_v34  ;;  %v3360_v34 = vld [vmem:[#allocation7 + $0xc0] sm:$0xf] }
 0x12c   :  { %1629 = vmatpush.bf16.msra.mxu3 %v3509_v35  ;;  %v3429_v35 = vor.u32 %v4198_v25, %v3426_v27  ;;  %v4179_v25 = vld [vmem:[#allocation7 + $0xac] sm:$0xf]  ;;  %v3354_v27 = vld [vmem:[#allocation7 + $0xb8] sm:$0xf0] }
 0x12d   :  { %v4376_v39 = vpop.eup %4375  ;;  %v1115_v40 = vadd.f32 %v1111_v38, %v1107_v37  ;;  %v3488_v37 = vld [vmem:[#allocation7 + $0x1c0] sm:$0xf]  ;;  %v4216_v38 = vld [vmem:[#allocation7 + $0x1cc] sm:$0xf0] }
 0x12e   :  { %v1129_v42 = vmul.f32 %v4376_v39, %v1113_v24 }
 0x12f   :  { %4377 = vrsqrt.f32 %v1115_v40  ;;  %vm1159_vm6 = vcmp.eq.f32.partialorder %v1115_v40, inf  ;;  %v1162_v6 = vand.u32 2147483648, %v1115_v40  ;;  %vm1161_vm7 = vcmp.eq.f32.partialorder %v1115_v40, 0.0 }
 0x130   :  { %v1130_v8 = vmul.f32 %v4376_v39, %v1129_v42  ;;  %v3362_v42 = vld [vmem:[#allocation7 + $0xd0] sm:$0xf0] }
 0x132   :  { %v1131_v15 = vmul.f32 0.5, %v1130_v8  ;;  %v3365_v8 = vor.u32 %v4182_v26, %v3362_v42  ;;  %v3281_v26 = vor.u32 %v4164_v32, %v3280_v31  ;;  %v3264_v42 = vld [vmem:[#allocation7] sm:$0xf]  ;;  %v3357_v32 = vor.u32 %v4179_v25, %v3354_v27  ;;  %v4191_v25 = vld [vmem:[#allocation7 + $0x10c] sm:$0xf] }
 0x133   :  { %v3402_v27 = vld [vmem:[#allocation7 + $0x118] sm:$0xf0] }
 0x134   :  { %v1132_v45 = vsub.f32 1.5, %v1131_v15  ;;  %v3344_v15 = vld [vmem:[#allocation7 + $0xa0] sm:$0xf]  ;;  %1616 = vmatpush.bf16.msra.mxu2 %v3365_v8 }
 0x135   :  { %v4378_v33 = vpop.eup %4377  ;;  %v3345_v48 = vor.u32 %v4180_v44, %v3344_v15  ;;  %v3392_v15 = vld [vmem:[#allocation7 + $0x100] sm:$0xf]  ;;  %v4192_v44 = vld [vmem:[#allocation7 + $0x10c] sm:$0xf0] }
 0x136   :  { %v1133_v47 = vmul.f32 %v4376_v39, %v1132_v45  ;;  %v1153_v49 = vmul.f32 %v4378_v33, %v1115_v40  ;;  %v3361_v39 = vor.u32 %v4184_v36, %v3360_v34  ;;  %v3493_v45 = vor.u32 %v4214_v41, %v3490_v43  ;;  %v3408_v34 = vld [vmem:[#allocation7 + $0x120] sm:$0xf]  ;;  %v4196_v36 = vld [vmem:[#allocation7 + $0x12c] sm:$0xf0] }
 0x137   :  { %v3409_v41 = vor.u32 %v4196_v36, %v3408_v34  ;;  %v4160_v43 = vld [vmem:[#allocation7 + $0xc] sm:$0xf0]  ;;  %v4177_v36 = vld [vmem:[#allocation7 + $0x94] sm:$0xf0] }
 0x138   :  { %v1134_v51 = vmul.f32 %v1133_v47, %v1113_v24  ;;  %v1154_v52 = vmul.f32 %v4378_v33, %v1153_v49  ;;  %v4178_v47 = vld [vmem:[#allocation7 + $0xa4] sm:$0xf]  ;;  %v3346_v49 = vld [vmem:[#allocation7 + $0xb0] sm:$0xf0]  ;;  %1630 = vmatpush.bf16.msra.mxu3 %v3493_v45 }
 0x139   :  { %v3349_v53 = vor.u32 %v4178_v47, %v3346_v49  ;;  %v3266_v47 = vld [vmem:[#allocation7 + $0x10] sm:$0xf0] }
 0x13a   :  { %v1136_v55 = vsel %vm1135_vm1, %v1113_v24, %v1134_v51  ;;  %v1155_v57 = vmul.f32 0.5, %v1154_v52  ;;  %v3377_v24 = vor.u32 %v4188_v22, %v3376_v21  ;;  %v3474_v51 = vld [vmem:[#allocation7 + $0x1b0] sm:$0xf0]  ;;  %v4200_v22 = vld [vmem:[#allocation7 + $0x14c] sm:$0xf0] }
 0x13b   :  { %v1139_v58 = vsel %vm1137_vm3, %v1138_v54, %v1136_v55  ;;  %v3328_v54 = vld [vmem:[#allocation7 + $0x80] sm:$0xf]  ;;  %v4176_v55 = vld [vmem:[#allocation7 + $0x8c] sm:$0xf0]  ;;  %1617 = vmatpush.bf16.msra.mxu2 %v3349_v53  ;;  %v4189_v53 = vld [vmem:[#allocation7 + $0xf4] sm:$0xf0] }
 0x13c   :  { %v1156_v61 = vsub.f32 1.5, %v1155_v57  ;;  %v1165_v2 = vadd.f32 1e-05, %v1139_v58  ;;  %1587 = vmatpush.bf16.msra.mxu0 %v3377_v24  ;;  %v3477_v57 = vor.u32 %v4210_v50, %v3474_v51  ;;  %v4208_v58 = vld [vmem:[#allocation7 + $0x18c] sm:$0xf0] }
 0x13d   :  { %v3298_v24 = vld [vmem:[#allocation7 + $0x50] sm:$0xf0] }
 0x13e   :  { %v1157_v63 = vmul.f32 %v4378_v33, %v1156_v61  ;;  %4379 = vlog2.f32 %v1165_v2  ;;  %v3472_v33 = vld [vmem:[#allocation7 + $0x1a0] sm:$0xf]  ;;  %v4206_v61 = vld [vmem:[#allocation7 + $0x184] sm:$0xf]  ;;  %v3457_v2 = vor.u32 %v4208_v58, %v3456_v56  ;;  %1631 = vmatpush.bf16.msra.mxu3 %v3477_v57  ;;  %v3301_v30 = vor.u32 %v4166_v23, %v3298_v24  ;;  %v3394_v51 = vld [vmem:[#allocation7 + $0x110] sm:$0xf0] }
 0x13f   :  { %4381 = vlog2.f32 %v1164_v3  ;;  %v3473_v52 = vor.u32 %v4212_v46, %v3472_v33  ;;  %v3333_v3 = vor.u32 %v4174_v59, %v3330_v60  ;;  %v4158_v46 = vld [vmem:[#allocation7 + $0x4] sm:$0xf]  ;;  %v4221_v56 = vld [vmem:[#allocation7 + $0x1f4] sm:$0xf0]  ;;  %v4187_v57 = vld [vmem:[#allocation7 + $0xec] sm:$0xf]  ;;  %v3393_v60 = vor.u32 %v4192_v44, %v3392_v15 }
 0x140   :  { %v1158_v4 = vmul.f32 %v1157_v63, %v1115_v40  ;;  %4383 = vlog2.f32 %v1166_v5  ;;  %1588 = vmatpush.bf16.msra.mxu0 %v3361_v39  ;;  %v3329_v63 = vor.u32 %v4176_v55, %v3328_v54  ;;  %v4172_v5 = vld [vmem:[#allocation7 + $0x6c] sm:$0xf0]  ;;  %v4194_v39 = vld [vmem:[#allocation7 + $0x124] sm:$0xf]  ;;  %v3265_v54 = vor.u32 %v4160_v43, %v3264_v42  ;;  %v3512_v55 = vld [vmem:[#allocation7 + $0x1e8] sm:$0xf] }
 0x141   :  { %1618 = vmatpush.bf16.msra.mxu2 %v3333_v3  ;;  %v3480_v23 = vld [vmem:[#allocation7 + $0x1a8] sm:$0xf]  ;;  %v4213_v24 = vld [vmem:[#allocation7 + $0x1b4] sm:$0xf0]  ;;  %v3466_v43 = vld [vmem:[#allocation7 + $0x198] sm:$0xf0] }
 0x142   :  { %v1160_v7 = vsel %vm1159_vm6, %v1115_v40, %v1158_v4  ;;  %v3489_v40 = vor.u32 %v4216_v38, %v3488_v37  ;;  %v3312_v4 = vld [vmem:[#allocation7 + $0x60] sm:$0xf]  ;;  %v4162_v37 = vld [vmem:[#allocation7 + $0x24] sm:$0xf]  ;;  %v3282_v38 = vld [vmem:[#allocation7 + $0x30] sm:$0xf0]  ;;  %v3481_v31 = vor.u32 %v4213_v24, %v3480_v23 }
 0x143   :  { %v1163_v9 = vsel %vm1161_vm7, %v1162_v6, %v1160_v7  ;;  %v3440_v6 = vld [vmem:[#allocation7 + $0x160] sm:$0xf]  ;;  %v3461_v7 = vor.u32 %v4206_v61, %v3458_v62  ;;  %v3285_v8 = vor.u32 %v4162_v37, %v3282_v38  ;;  %v3386_v61 = vld [vmem:[#allocation7 + $0xf8] sm:$0xf0]  ;;  %v4219_v62 = vld [vmem:[#allocation7 + $0x1ec] sm:$0xf] }
 0x144   :  { %v1167_v0 = vadd.f32 1e-05, %v1163_v9  ;;  %v4380_v10 = vpop.eup %4379  ;;  %1602 = vmatpush.bf16.msra.mxu1 %v3489_v40  ;;  %1589 = vmatpush.bf16.msra.mxu0 %v3345_v48  ;;  %v4204_v9 = vld [vmem:[#allocation7 + $0x16c] sm:$0xf0]  ;;  %v3410_v40 = vld [vmem:[#allocation7 + $0x130] sm:$0xf0] }
 0x145   :  { %v4382_v11 = vpop.eup %4381  ;;  %v1171_v12 = vmul.f32 0.6931472, %v4380_v10  ;;  %v3314_v10 = vld [vmem:[#allocation7 + $0x70] sm:$0xf0]  ;;  %1632 = vmatpush.bf16.msra.mxu3 %v3461_v7  ;;  %v3413_v33 = vor.u32 %v4194_v39, %v3410_v40  ;;  %v4190_v48 = vld [vmem:[#allocation7 + $0x104] sm:$0xf] }
 0x146   :  { %4385 = vlog2.f32 %v1167_v0  ;;  %v4384_v1 = vpop.eup %4383  ;;  %v1169_v14 = vmul.f32 0.6931472, %v4382_v11  ;;  %v4170_v0 = vld [vmem:[#allocation7 + $0x64] sm:$0xf]  ;;  %v3397_v3 = vor.u32 %v4190_v48, %v3394_v51  ;;  %v3368_v7 = vld [vmem:[#allocation7 + $0xc8] sm:$0xf] }
 0x147   :  { %v1173_v16 = vmul.f32 0.6931472, %v4384_v1  ;;  %v4202_v11 = vld [vmem:[#allocation7 + $0x164] sm:$0xf]  ;;  %v3442_v1 = vld [vmem:[#allocation7 + $0x170] sm:$0xf0] }
 0x148   :  { %v4654_v18 = vmax.f32 %v1169_v14, %v1171_v12  ;;  %1603 = vmatpush.bf16.msra.mxu1 %v3473_v52  ;;  %1590 = vmatpush.bf16.msra.mxu0 %v3329_v63  ;;  %v3313_v12 = vor.u32 %v4172_v5, %v3312_v4  ;;  %v3317_v14 = vor.u32 %v4170_v0, %v3314_v10  ;;  %v3384_v52 = vld [vmem:[#allocation7 + $0xe8] sm:$0xf]  ;;  %v3514_v63 = vld [vmem:[#allocation7 + $0x1f8] sm:$0xf0]  ;;  %v4217_v10 = vld [vmem:[#allocation7 + $0x1d4] sm:$0xf0] }
 0x149   :  { %v3445_v21 = vor.u32 %v4202_v11, %v3442_v1  ;;  %v3385_v5 = vor.u32 %v4189_v53, %v3384_v52  ;;  %v3496_v0 = vld [vmem:[#allocation7 + $0x1c8] sm:$0xf]  ;;  %v4183_v11 = vld [vmem:[#allocation7 + $0xcc] sm:$0xf]  ;;  %v3370_v1 = vld [vmem:[#allocation7 + $0xd8] sm:$0xf0] }
 0x14a   :  { %1619 = vmatpush.bf16.msra.mxu2 %v3317_v14  ;;  %v3464_v37 = vld [vmem:[#allocation7 + $0x188] sm:$0xf]  ;;  %v4209_v39 = vld [vmem:[#allocation7 + $0x194] sm:$0xf0]  ;;  %v4175_v40 = vld [vmem:[#allocation7 + $0x8c] sm:$0xf] }
 0x14b   :  { %1633 = vmatpush.bf16.msra.mxu3 %v3445_v21  ;;  %v3373_v21 = vor.u32 %v4183_v11, %v3370_v1  ;;  %v3465_v42 = vor.u32 %v4209_v39, %v3464_v37  ;;  %v3320_v44 = vld [vmem:[#allocation7 + $0x68] sm:$0xf]  ;;  %v4171_v48 = vld [vmem:[#allocation7 + $0x6c] sm:$0xf]  ;;  %v3450_v53 = vld [vmem:[#allocation7 + $0x178] sm:$0xf0] }
 0x14c   :  { %v4386_v13 = vpop.eup %4385  ;;  %1604 = vmatpush.bf16.msra.mxu1 %v3457_v2  ;;  %1591 = vmatpush.bf16.msra.mxu0 %v3313_v12  ;;  %v3269_v2 = vor.u32 %v4158_v46, %v3266_v47  ;;  %v4215_v12 = vld [vmem:[#allocation7 + $0x1cc] sm:$0xf]  ;;  %v4205_v47 = vld [vmem:[#allocation7 + $0x174] sm:$0xf0]  ;;  %v3290_v11 = vld [vmem:[#allocation7 + $0x38] sm:$0xf0] }
 0x14d   :  { %v1175_v17 = vmul.f32 0.6931472, %v4386_v13  ;;  %v3441_v13 = vor.u32 %v4204_v9, %v3440_v6  ;;  %v3513_v6 = vor.u32 %v4221_v56, %v3512_v55  ;;  %v3389_v9 = vor.u32 %v4187_v57, %v3386_v61  ;;  %v4203_v52 = vld [vmem:[#allocation7 + $0x16c] sm:$0xf]  ;;  %v4169_v56 = vld [vmem:[#allocation7 + $0x54] sm:$0xf0] }
 0x14e   :  { %1620 = vmatpush.bf16.msra.mxu2 %v3301_v30  ;;  %v3453_v55 = vor.u32 %v4203_v52, %v3450_v53  ;;  %v3432_v57 = vld [vmem:[#allocation7 + $0x148] sm:$0xf]  ;;  %v4195_v1 = vld [vmem:[#allocation7 + $0x12c] sm:$0xf]  ;;  %v3274_v24 = vld [vmem:[#allocation7 + $0x18] sm:$0xf0] }
 0x14f   :  { %v4656_v19 = vmax.f32 %v1173_v16, %v1175_v17  ;;  %v3296_v16 = vld [vmem:[#allocation7 + $0x40] sm:$0xf]  ;;  %v4168_v17 = vld [vmem:[#allocation7 + $0x4c] sm:$0xf0]  ;;  %1634 = vmatpush.bf16.msra.mxu3 %v3429_v35  ;;  %v3336_v35 = vld [vmem:[#allocation7 + $0x88] sm:$0xf] }
 0x150   :  { %v3297_v28 = vor.u32 %v4168_v17, %v3296_v16  ;;  %1605 = vmatpush.bf16.msra.mxu1 %v3441_v13  ;;  %v3498_v13 = vld [vmem:[#allocation7 + $0x1d8] sm:$0xf0]  ;;  %v3497_v16 = vor.u32 %v4217_v10, %v3496_v0  ;;  %v3352_v17 = vld [vmem:[#allocation7 + $0xa8] sm:$0xf]  ;;  %v3337_v38 = vor.u32 %v4177_v36, %v3336_v35  ;;  %v4163_v0 = vld [vmem:[#allocation7 + $0x2c] sm:$0xf] }
 0x151   :  { %v4361_v20 = vpack.i.bf16 %v4656_v19, %v4654_v18  ;;  %v4159_v23 = vld [vmem:[#allocation7 + $0xc] sm:$0xf]  ;;  %v3632_v36 = vld [vmem:[#allocation10 + $0xe0] sm:$0xf]  ;;  %v4252_v37 = vld [vmem:[#allocation10 + $0xec] sm:$0xf0] }
 0x152   :  { %1592 = vmatpush.bf16.msra.mxu0 %v3297_v28  ;;  %1621 = vmatpush.bf16.msra.mxu2 %v3285_v8  ;;  %v4211_v28 = vld [vmem:[#allocation7 + $0x1ac] sm:$0xf]  ;;  %v4284_v39 = vld [vmem:[#allocation10 + $0x1ec] sm:$0xf0] }
 0x153   :  { %4362 = vrot.lane.b32.xlu0 %v4361_v20, %s4548_s4  ;;  %v3424_v20 = vld [vmem:[#allocation7 + $0x140] sm:$0xf]  ;;  %1635 = vmatpush.bf16.msra.mxu3 %v3413_v33  ;;  %v4207_v8 = vld [vmem:[#allocation7 + $0x18c] sm:$0xf]  ;;  %v3448_v33 = vld [vmem:[#allocation7 + $0x168] sm:$0xf] }
 0x154   :  { %v3425_v29 = vor.u32 %v4200_v22, %v3424_v20  ;;  %v4181_v20 = vld [vmem:[#allocation7 + $0xb4] sm:$0xf0]  ;;  %v3501_v22 = vor.u32 %v4215_v12, %v3498_v13  ;;  %v3469_v15 = vor.u32 %v4207_v8, %v3466_v43  ;;  %v3418_v12 = vld [vmem:[#allocation7 + $0x138] sm:$0xf0]  ;;  %v4016_v8 = vld [vmem:[#allocation10 + $0x3e0] sm:$0xf] }
 0x155   :  { %v3353_v30 = vor.u32 %v4181_v20, %v3352_v17  ;;  %v4161_v17 = vld [vmem:[#allocation7 + $0x14] sm:$0xf0]  ;;  %v3400_v20 = vld [vmem:[#allocation7 + $0x108] sm:$0xf]  ;;  %v4348_v43 = vld [vmem:[#allocation10 + $0x3ec] sm:$0xf0] }
 0x156   :  { %1606 = vmatpush.bf16.msra.mxu1 %v3425_v29  ;;  %1593 = vmatpush.bf16.msra.mxu0 %v3281_v26  ;;  %v3482_v29 = vld [vmem:[#allocation7 + $0x1b8] sm:$0xf0]  ;;  %v4344_v52 = vld [vmem:[#allocation10 + $0x3cc] sm:$0xf0] }
 0x157   :  { %1622 = vmatpush.bf16.msra.mxu2 %v3269_v2  ;;  %1636 = vmatpush.bf16.msra.mxu3 %v3397_v3  ;;  %v3485_v34 = vor.u32 %v4211_v28, %v3482_v29  ;;  %v3338_v26 = vld [vmem:[#allocation7 + $0x98] sm:$0xf0]  ;;  %v4199_v3 = vld [vmem:[#allocation7 + $0x14c] sm:$0xf] }
 0x158   :  { %v3306_v2 = vld [vmem:[#allocation7 + $0x58] sm:$0xf0] }
 0x15a   :  { %1607 = vmatpush.bf16.msra.mxu1 %v3409_v41  ;;  %1594 = vmatpush.bf16.msra.mxu0 %v3265_v54  ;;  %v3341_v41 = vor.u32 %v4175_v40, %v3338_v26  ;;  %v3304_v54 = vld [vmem:[#allocation7 + $0x48] sm:$0xf]  ;;  %v3888_v40 = vld [vmem:[#allocation10 + $0x2e0] sm:$0xf] }
 0x15b   :  { %1671 = vmatpush.bf16.msrb.mxu2 %v3389_v9  ;;  %v3305_v61 = vor.u32 %v4169_v56, %v3304_v54  ;;  %v3416_v9 = vld [vmem:[#allocation7 + $0x128] sm:$0xf]  ;;  %v3600_v54 = vld [vmem:[#allocation10 + $0xa0] sm:$0xf] }
 0x15e   :  { %1608 = vmatpush.bf16.msra.mxu1 %v3393_v60  ;;  %1643 = vmatpush.bf16.msrb.mxu0 %v3385_v5  ;;  %v4201_v60 = vld [vmem:[#allocation7 + $0x154] sm:$0xf0]  ;;  %v3434_v5 = vld [vmem:[#allocation7 + $0x158] sm:$0xf0] }
 0x15f   :  { %1672 = vmatpush.bf16.msrb.mxu2 %v3373_v21  ;;  %v3421_v21 = vor.u32 %v4195_v1, %v3418_v12  ;;  %v4304_v1 = vld [vmem:[#allocation10 + $0x28c] sm:$0xf0]  ;;  %v3968_v12 = vld [vmem:[#allocation10 + $0x380] sm:$0xf] }
 0x162   :  { %1657 = vmatpush.bf16.msrb.mxu1 %v3513_v6  ;;  %v3288_v6 = vld [vmem:[#allocation7 + $0x28] sm:$0xf] }
 0x163   :  { %1673 = vmatpush.bf16.msrb.mxu2 %v3357_v32 }
 0x166   :  { %1658 = vmatpush.bf16.msrb.mxu1 %v3497_v16  ;;  %v3272_v16 = vld [vmem:[#allocation7 + $0x8] sm:$0xf] }
 0x167   :  { %1674 = vmatpush.bf16.msrb.mxu2 %v3341_v41  ;;  %v3273_v28 = vor.u32 %v4161_v17, %v3272_v16  ;;  %v4316_v41 = vld [vmem:[#allocation10 + $0x2ec] sm:$0xf0]  ;;  %v3568_v16 = vld [vmem:[#allocation10 + $0x60] sm:$0xf] }
 0x168   :  { %v4236_v17 = vld [vmem:[#allocation10 + $0x6c] sm:$0xf0] }
 0x16a   :  { %1659 = vmatpush.bf16.msrb.mxu1 %v3481_v31  ;;  %v3405_v31 = vor.u32 %v4191_v25, %v3402_v27  ;;  %v4300_v27 = vld [vmem:[#allocation10 + $0x26c] sm:$0xf0] }
 0x16e   :  { %1660 = vmatpush.bf16.msrb.mxu1 %v3465_v42 }
 0x1c5   :  { %v4363_v45 = vpop.permute.xlu0 %4362 }
 0x1c6   :  { %v4365_v49 = vunpack.i.h.bf16 %v4363_v45  ;;  %v4364_v50 = vunpack.i.l.bf16 %v4363_v45  ;;  %v4173_v45 = vld [vmem:[#allocation7 + $0x74] sm:$0xf0] }
 0x1c7   :  { %v3321_v46 = vor.u32 %v4173_v45, %v3320_v44  ;;  %v3633_v44 = vor.u32 %v4252_v37, %v3632_v36  ;;  %v3616_v45 = vld [vmem:[#allocation10 + $0xc0] sm:$0xf]  ;;  %v4264_v36 = vld [vmem:[#allocation10 + $0x14c] sm:$0xf0] }
 0x1c8   :  { %v4661_v58 = vmax.f32 %v4654_v18, %v4364_v50  ;;  %v4664_v59 = vmax.f32 %v4656_v19, %v4365_v49  ;;  %v4185_v18 = vld [vmem:[#allocation7 + $0xd4] sm:$0xf0]  ;;  %v3517_v19 = vor.u32 %v4219_v62, %v3514_v63  ;;  %v3322_v49 = vld [vmem:[#allocation7 + $0x78] sm:$0xf0]  ;;  %v3449_v50 = vor.u32 %v4205_v47, %v3448_v33  ;;  %v4167_v63 = vld [vmem:[#allocation7 + $0x4c] sm:$0xf] }
 0x1c9   :  { %v3369_v14 = vor.u32 %v4185_v18, %v3368_v7  ;;  %v3325_v51 = vor.u32 %v4171_v48, %v3322_v49  ;;  %v3433_v62 = vor.u32 %v4201_v60, %v3432_v57  ;;  %v4165_v7 = vld [vmem:[#allocation7 + $0x34] sm:$0xf0]  ;;  %v3437_v18 = vor.u32 %v4199_v3, %v3434_v5  ;;  %v4248_v33 = vld [vmem:[#allocation10 + $0xcc] sm:$0xf0]  ;;  %v3744_v47 = vld [vmem:[#allocation10 + $0x1c0] sm:$0xf] }
 0x1ca   :  { %v4366_v4 = vpack.i.bf16 %v4664_v59, %v4661_v58  ;;  %1685 = vmatpush.bf16.msrb.mxu3 %v3517_v19  ;;  %1661 = vmatpush.bf16.msrb.mxu1 %v3449_v50  ;;  %v4197_v19 = vld [vmem:[#allocation7 + $0x134] sm:$0xf0]  ;;  %v3289_v10 = vor.u32 %v4165_v7, %v3288_v6  ;;  %v4280_v48 = vld [vmem:[#allocation10 + $0x1cc] sm:$0xf0]  ;;  %v3889_v49 = vor.u32 %v4316_v41, %v3888_v40  ;;  %v3872_v50 = vld [vmem:[#allocation10 + $0x2c0] sm:$0xf] }
 0x1cb   :  { %1644 = vmatpush.bf16.msrb.mxu0 %v3369_v14  ;;  %1675 = vmatpush.bf16.msrb.mxu2 %v3325_v51  ;;  %v3417_v13 = vor.u32 %v4197_v19, %v3416_v9  ;;  %v3293_v14 = vor.u32 %v4163_v0, %v3290_v11  ;;  %v4017_v51 = vor.u32 %v4348_v43, %v4016_v8  ;;  %v3728_v57 = vld [vmem:[#allocation10 + $0x1a0] sm:$0xf]  ;;  %v4276_v60 = vld [vmem:[#allocation10 + $0x1ac] sm:$0xf0] }
 0x1cc   :  { %4367 = vrot.lane.b32.xlu0 %v4366_v4, %s4545_s16  ;;  %v3309_v4 = vor.u32 %v4167_v63, %v3306_v2  ;;  %v3617_v53 = vor.u32 %v4248_v33, %v3616_v45  ;;  %v3745_v56 = vor.u32 %v4280_v48, %v3744_v47  ;;  %v4308_v2 = vld [vmem:[#allocation10 + $0x2ac] sm:$0xf0]  ;;  %v3984_v3 = vld [vmem:[#allocation10 + $0x3a0] sm:$0xf] }
 0x1cd   :  { %v3584_v6 = vld [vmem:[#allocation10 + $0x80] sm:$0xf]  ;;  %v4240_v7 = vld [vmem:[#allocation10 + $0x8c] sm:$0xf0] }
 0x1ce   :  { %1686 = vmatpush.bf16.msrb.mxu3 %v3501_v22  ;;  %1662 = vmatpush.bf16.msrb.mxu1 %v3433_v62  ;;  %v4193_v22 = vld [vmem:[#allocation7 + $0x114] sm:$0xf0]  ;;  %v3856_v62 = vld [vmem:[#allocation10 + $0x2a0] sm:$0xf]  ;;  %v4272_v19 = vld [vmem:[#allocation10 + $0x18c] sm:$0xf0] }
 0x1cf   :  { %1645 = vmatpush.bf16.msrb.mxu0 %v3353_v30  ;;  %1676 = vmatpush.bf16.msrb.mxu2 %v3309_v4  ;;  %v3401_v29 = vor.u32 %v4193_v22, %v3400_v20  ;;  %v3277_v30 = vor.u32 %v4159_v23, %v3274_v24  ;;  %v4340_v4 = vld [vmem:[#allocation10 + $0x3ac] sm:$0xf0]  ;;  %v3712_v9 = vld [vmem:[#allocation10 + $0x180] sm:$0xf]  ;;  %v3857_v0 = vor.u32 %v4308_v2, %v3856_v62  ;;  %v3618_v62 = vld [vmem:[#allocation10 + $0xd0] sm:$0xf0] }
 0x1d0   :  { %v3985_v11 = vor.u32 %v4340_v4, %v3984_v3  ;;  %v3713_v20 = vor.u32 %v4272_v19, %v3712_v9  ;;  %v4268_v22 = vld [vmem:[#allocation10 + $0x16c] sm:$0xf0]  ;;  %v3824_v24 = vld [vmem:[#allocation10 + $0x260] sm:$0xf]  ;;  %v3746_v2 = vld [vmem:[#allocation10 + $0x1d0] sm:$0xf0] }
 0x1d1   :  { %v3825_v37 = vor.u32 %v4300_v27, %v3824_v24  ;;  %v4296_v40 = vld [vmem:[#allocation10 + $0x24c] sm:$0xf0]  ;;  %v3664_v43 = vld [vmem:[#allocation10 + $0x120] sm:$0xf]  ;;  %v3586_v9 = vld [vmem:[#allocation10 + $0x90] sm:$0xf0] }
 0x1d2   :  { %1687 = vmatpush.bf16.msrb.mxu3 %v3485_v34  ;;  %1663 = vmatpush.bf16.msrb.mxu1 %v3417_v13  ;;  %v4336_v13 = vld [vmem:[#allocation10 + $0x38c] sm:$0xf0]  ;;  %v3792_v33 = vld [vmem:[#allocation10 + $0x220] sm:$0xf]  ;;  %v3890_v24 = vld [vmem:[#allocation10 + $0x2f0] sm:$0xf0] }
 0x1d3   :  { %1646 = vmatpush.bf16.msrb.mxu0 %v3337_v38  ;;  %1677 = vmatpush.bf16.msrb.mxu2 %v3293_v14  ;;  %v3760_v38 = vld [vmem:[#allocation10 + $0x1e0] sm:$0xf]  ;;  %v3585_v14 = vor.u32 %v4240_v7, %v3584_v6  ;;  %v3969_v25 = vor.u32 %v4336_v13, %v3968_v12  ;;  %v4228_v8 = vld [vmem:[#allocation10 + $0x2c] sm:$0xf0]  ;;  %v3602_v6 = vld [vmem:[#allocation10 + $0xb0] sm:$0xf0] }
 0x1d4   :  { %v3520_v48 = vld [vmem:[#allocation10] sm:$0xf]  ;;  %v3730_v12 = vld [vmem:[#allocation10 + $0x1b0] sm:$0xf0]  ;;  %v4324_v27 = vld [vmem:[#allocation10 + $0x32c] sm:$0xf0] }
 0x1d6   :  { %1688 = vmatpush.bf16.msrb.mxu3 %v3469_v15  ;;  %1664 = vmatpush.bf16.msrb.mxu1 %v3401_v29  ;;  %v4332_v29 = vld [vmem:[#allocation10 + $0x36c] sm:$0xf0] }
 0x1d7   :  { %1647 = vmatpush.bf16.msrb.mxu0 %v3321_v46  ;;  %1678 = vmatpush.bf16.msrb.mxu2 %v3277_v30  ;;  %v3761_v46 = vor.u32 %v4284_v39, %v3760_v38  ;;  %v3569_v30 = vor.u32 %v4236_v17, %v3568_v16  ;;  %v3808_v39 = vld [vmem:[#allocation10 + $0x240] sm:$0xf]  ;;  %v4288_v16 = vld [vmem:[#allocation10 + $0x20c] sm:$0xf0] }
 0x1d8   :  { %v3809_v45 = vor.u32 %v4296_v40, %v3808_v39  ;;  %v3904_v39 = vld [vmem:[#allocation10 + $0x300] sm:$0xf]  ;;  %v4320_v40 = vld [vmem:[#allocation10 + $0x30c] sm:$0xf0] }
 0x1da   :  { %1689 = vmatpush.bf16.msrb.mxu3 %v3453_v55  ;;  %v4244_v55 = vld [vmem:[#allocation10 + $0xac] sm:$0xf0] }
 0x1db   :  { %1648 = vmatpush.bf16.msrb.mxu0 %v3305_v61  ;;  %v3601_v5 = vor.u32 %v4244_v55, %v3600_v54  ;;  %v3762_v54 = vld [vmem:[#allocation10 + $0x1f0] sm:$0xf0] }
 0x1de   :  { %1690 = vmatpush.bf16.msrb.mxu3 %v3437_v18  ;;  %v3729_v18 = vor.u32 %v4276_v60, %v3728_v57  ;;  %v4246_v60 = vld [vmem:[#allocation10 + $0xc4] sm:$0xf] }
 0x1df   :  { %1649 = vmatpush.bf16.msrb.mxu0 %v3289_v10  ;;  %v3840_v10 = vld [vmem:[#allocation10 + $0x280] sm:$0xf]  ;;  %v3621_v3 = vor.u32 %v4246_v60, %v3618_v62 }
 0x1e0   :  { %v3841_v23 = vor.u32 %v4304_v1, %v3840_v10  ;;  %v4328_v10 = vld [vmem:[#allocation10 + $0x34c] sm:$0xf0]  ;;  %v4274_v1 = vld [vmem:[#allocation10 + $0x1a4] sm:$0xf] }
 0x1e1   :  { %v3733_v13 = vor.u32 %v4274_v1, %v3730_v12  ;;  %v3970_v1 = vld [vmem:[#allocation10 + $0x390] sm:$0xf0] }
 0x1e2   :  { %1691 = vmatpush.bf16.msrb.mxu3 %v3421_v21  ;;  %v3696_v21 = vld [vmem:[#allocation10 + $0x160] sm:$0xf] }
 0x1e3   :  { %1650 = vmatpush.bf16.msrb.mxu0 %v3273_v28  ;;  %v3952_v28 = vld [vmem:[#allocation10 + $0x360] sm:$0xf] }
 0x1e4   :  { %v3953_v38 = vor.u32 %v4332_v29, %v3952_v28 }
 0x1e6   :  { %1692 = vmatpush.bf16.msrb.mxu3 %v3405_v31  ;;  %v3552_v31 = vld [vmem:[#allocation10 + $0x40] sm:$0xf] }
 0x23e   :  { %v4368_v32 = vpop.permute.xlu0 %4367 }
 0x23f   :  { %v4370_v34 = vunpack.i.h.bf16 %v4368_v32  ;;  %v4369_v35 = vunpack.i.l.bf16 %v4368_v32  ;;  %v3697_v32 = vor.u32 %v4268_v22, %v3696_v21  ;;  %v3570_v21 = vld [vmem:[#allocation10 + $0x70] sm:$0xf0]  ;;  %v4314_v22 = vld [vmem:[#allocation10 + $0x2e4] sm:$0xf] }
 0x240   :  { %v3893_v28 = vor.u32 %v4314_v22, %v3890_v24  ;;  %v4290_v22 = vld [vmem:[#allocation10 + $0x224] sm:$0xf] }
 0x241   :  { %v1191_v26 = vmax.f32 %v4664_v59, %v4370_v34  ;;  %v1190_v42 = vmax.f32 %v4661_v58, %v4369_v35  ;;  %v4312_v59 = vld [vmem:[#allocation10 + $0x2cc] sm:$0xf0]  ;;  %v4000_v58 = vld [vmem:[#allocation10 + $0x3c0] sm:$0xf] }
 0x242   :  { %v3873_v61 = vor.u32 %v4312_v59, %v3872_v50  ;;  %v4001_v63 = vor.u32 %v4344_v52, %v4000_v58  ;;  %v4232_v34 = vld [vmem:[#allocation10 + $0x4c] sm:$0xf0]  ;;  %v3680_v35 = vld [vmem:[#allocation10 + $0x140] sm:$0xf]  ;;  %v3634_v52 = vld [vmem:[#allocation10 + $0xf0] sm:$0xf0] }
 0x243   :  { %v4671_v15 = vpack.c.bf16 %v1191_v26, %v1190_v42  ;;  %v3553_v26 = vor.u32 %v4232_v34, %v3552_v31  ;;  %v3536_v42 = vld [vmem:[#allocation10 + $0x20] sm:$0xf]  ;;  %v3681_v41 = vor.u32 %v4264_v36, %v3680_v35  ;;  %v4256_v59 = vld [vmem:[#allocation10 + $0x10c] sm:$0xf0]  ;;  %v3714_v31 = vld [vmem:[#allocation10 + $0x190] sm:$0xf0] }
 0x244   :  { %v3537_v47 = vor.u32 %v4228_v8, %v3536_v42  ;;  %v4230_v34 = vld [vmem:[#allocation10 + $0x44] sm:$0xf]  ;;  %v3554_v35 = vld [vmem:[#allocation10 + $0x50] sm:$0xf0]  ;;  %v3905_v42 = vor.u32 %v4320_v40, %v3904_v39 }
 0x245   :  { %1595 = vmatmul.bf16.vlgmr.msra.gmra.mxu0 %v4671_v15  ;;  %1609 = vmatmul.bf16.vlgmr.msra.gmra.mxu1 %v4671_v15  ;;  %v4310_v36 = vld [vmem:[#allocation10 + $0x2c4] sm:$0xf]  ;;  %v3698_v8 = vld [vmem:[#allocation10 + $0x170] sm:$0xf0] }
 0x246   :  { %1623 = vmatmul.bf16.vlgmr.msra.gmra.mxu2 %v4671_v15  ;;  %1637 = vmatmul.bf16.vlgmr.msra.gmra.mxu3 %v4671_v15 }
 0x247   :  { %2489 = vmatpush.bf16.msra.mxu0 %v3633_v44  ;;  %2503 = vmatpush.bf16.msra.mxu1 %v3761_v46  ;;  %v4260_v44 = vld [vmem:[#allocation10 + $0x12c] sm:$0xf0] }
 0x248   :  { %2517 = vmatpush.bf16.msra.mxu2 %v3889_v49  ;;  %2531 = vmatpush.bf16.msra.mxu3 %v4017_v51  ;;  %v4292_v46 = vld [vmem:[#allocation10 + $0x22c] sm:$0xf0]  ;;  %v3665_v50 = vor.u32 %v4260_v44, %v3664_v43  ;;  %v3648_v51 = vld [vmem:[#allocation10 + $0x100] sm:$0xf]  ;;  %v4346_v43 = vld [vmem:[#allocation10 + $0x3e4] sm:$0xf] }
 0x249   :  { %v4224_v49 = vld [vmem:[#allocation10 + $0xc] sm:$0xf0]  ;;  %v3793_v58 = vor.u32 %v4292_v46, %v3792_v33  ;;  %v4226_v46 = vld [vmem:[#allocation10 + $0x24] sm:$0xf] }
 0x24a   :  { %v3521_v55 = vor.u32 %v4224_v49, %v3520_v48  ;;  %v4306_v48 = vld [vmem:[#allocation10 + $0x2a4] sm:$0xf] }
 0x24b   :  { %2490 = vmatpush.bf16.msra.mxu0 %v3617_v53  ;;  %2504 = vmatpush.bf16.msra.mxu1 %v3745_v56  ;;  %v4282_v53 = vld [vmem:[#allocation10 + $0x1e4] sm:$0xf]  ;;  %v3649_v56 = vor.u32 %v4256_v59, %v3648_v51  ;;  %v3682_v59 = vld [vmem:[#allocation10 + $0x150] sm:$0xf0] }
 0x24c   :  { %2518 = vmatpush.bf16.msra.mxu2 %v3873_v61  ;;  %2532 = vmatpush.bf16.msra.mxu3 %v4001_v63  ;;  %v3765_v61 = vor.u32 %v4282_v53, %v3762_v54  ;;  %v4278_v63 = vld [vmem:[#allocation10 + $0x1c4] sm:$0xf]  ;;  %v4002_v53 = vld [vmem:[#allocation10 + $0x3d0] sm:$0xf0] }
 0x24d   :  { %v3749_v4 = vor.u32 %v4278_v63, %v3746_v2  ;;  %v4262_v51 = vld [vmem:[#allocation10 + $0x144] sm:$0xf]  ;;  %v3666_v2 = vld [vmem:[#allocation10 + $0x130] sm:$0xf0] }
 0x24e   :  { %v4258_v63 = vld [vmem:[#allocation10 + $0x124] sm:$0xf] }
 0x24f   :  { %2491 = vmatpush.bf16.msra.mxu0 %v3601_v5  ;;  %2505 = vmatpush.bf16.msra.mxu1 %v3729_v18  ;;  %v4242_v5 = vld [vmem:[#allocation10 + $0xa4] sm:$0xf] }
 0x250   :  { %2519 = vmatpush.bf16.msra.mxu2 %v3857_v0  ;;  %2533 = vmatpush.bf16.msra.mxu3 %v3985_v11  ;;  %v3605_v7 = vor.u32 %v4242_v5, %v3602_v6  ;;  %v4238_v18 = vld [vmem:[#allocation10 + $0x84] sm:$0xf]  ;;  %v3936_v0 = vld [vmem:[#allocation10 + $0x340] sm:$0xf]  ;;  %v3986_v5 = vld [vmem:[#allocation10 + $0x3b0] sm:$0xf0] }
 0x251   :  { %v3589_v19 = vor.u32 %v4238_v18, %v3586_v9  ;;  %v3937_v11 = vor.u32 %v4328_v10, %v3936_v0  ;;  %v3826_v18 = vld [vmem:[#allocation10 + $0x270] sm:$0xf0]  ;;  %v4334_v10 = vld [vmem:[#allocation10 + $0x384] sm:$0xf] }
 0x252   :  { %v3650_v0 = vld [vmem:[#allocation10 + $0x110] sm:$0xf0]  ;;  %v3973_v12 = vor.u32 %v4334_v10, %v3970_v1  ;;  %v3752_v1 = vld [vmem:[#allocation10 + $0x1c8] sm:$0xf] }
 0x253   :  { %2492 = vmatpush.bf16.msra.mxu0 %v3585_v14  ;;  %2506 = vmatpush.bf16.msra.mxu1 %v3713_v20  ;;  %v3776_v14 = vld [vmem:[#allocation10 + $0x200] sm:$0xf]  ;;  %v4234_v20 = vld [vmem:[#allocation10 + $0x64] sm:$0xf] }
 0x254   :  { %2520 = vmatpush.bf16.msra.mxu2 %v3841_v23  ;;  %2534 = vmatpush.bf16.msra.mxu3 %v3969_v25  ;;  %v3777_v17 = vor.u32 %v4288_v16, %v3776_v14  ;;  %v3573_v23 = vor.u32 %v4234_v20, %v3570_v21  ;;  %v3920_v25 = vld [vmem:[#allocation10 + $0x320] sm:$0xf]  ;;  %v3810_v14 = vld [vmem:[#allocation10 + $0x250] sm:$0xf0] }
 0x255   :  { %1651 = vmatmul.bf16.vlgmr.msrb.gmra.mxu0 %v4671_v15  ;;  %1665 = vmatmul.bf16.vlgmr.msrb.gmra.mxu1 %v4671_v15  ;;  %v3921_v29 = vor.u32 %v4324_v27, %v3920_v25  ;;  %v3954_v20 = vld [vmem:[#allocation10 + $0x370] sm:$0xf0]  ;;  %v4326_v25 = vld [vmem:[#allocation10 + $0x344] sm:$0xf] }
 0x256   :  { %1679 = vmatmul.bf16.vlgmr.msrb.gmra.mxu2 %v4671_v15  ;;  %1693 = vmatmul.bf16.vlgmr.msrb.gmra.mxu3 %v4671_v15  ;;  %v4250_v15 = vld [vmem:[#allocation10 + $0xe4] sm:$0xf]  ;;  %v3938_v27 = vld [vmem:[#allocation10 + $0x350] sm:$0xf0] }
 0x257   :  { %2493 = vmatpush.bf16.msra.mxu0 %v3569_v30  ;;  %2507 = vmatpush.bf16.msra.mxu1 %v3697_v32  ;;  %v3637_v57 = vor.u32 %v4250_v15, %v3634_v52  ;;  %v4270_v30 = vld [vmem:[#allocation10 + $0x184] sm:$0xf]  ;;  %v3685_v52 = vor.u32 %v4262_v51, %v3682_v59 }
 0x258   :  { %2521 = vmatpush.bf16.msra.mxu2 %v3825_v37  ;;  %2535 = vmatpush.bf16.msra.mxu3 %v3953_v38  ;;  %v3717_v32 = vor.u32 %v4270_v30, %v3714_v31  ;;  %v3557_v37 = vor.u32 %v4230_v34, %v3554_v35  ;;  %v3874_v38 = vld [vmem:[#allocation10 + $0x2d0] sm:$0xf0]  ;;  %v4286_v30 = vld [vmem:[#allocation10 + $0x204] sm:$0xf] }
 0x259   :  { %v3778_v31 = vld [vmem:[#allocation10 + $0x210] sm:$0xf0] }
 0x25a   :  { %v3781_v35 = vor.u32 %v4286_v30, %v3778_v31  ;;  %v4277_v30 = vld [vmem:[#allocation10 + $0x1b4] sm:$0xf0] }
 0x25b   :  { %2494 = vmatpush.bf16.msra.mxu0 %v3553_v26  ;;  %2508 = vmatpush.bf16.msra.mxu1 %v3681_v41  ;;  %v3877_v26 = vor.u32 %v4310_v36, %v3874_v38  ;;  %v4266_v41 = vld [vmem:[#allocation10 + $0x164] sm:$0xf]  ;;  %v3922_v38 = vld [vmem:[#allocation10 + $0x330] sm:$0xf0] }
 0x25c   :  { %2522 = vmatpush.bf16.msra.mxu2 %v3809_v45  ;;  %2536 = vmatpush.bf16.msra.mxu3 %v3937_v11  ;;  %v3701_v44 = vor.u32 %v4266_v41, %v3698_v8  ;;  %v4018_v45 = vld [vmem:[#allocation10 + $0x3f0] sm:$0xf0] }
 0x25d   :  { %v4021_v33 = vor.u32 %v4346_v43, %v4018_v45 }
 0x25f   :  { %2495 = vmatpush.bf16.msra.mxu0 %v3537_v47  ;;  %2509 = vmatpush.bf16.msra.mxu1 %v3665_v50  ;;  %v3538_v47 = vld [vmem:[#allocation10 + $0x30] sm:$0xf0] }
 0x260   :  { %2523 = vmatpush.bf16.msra.mxu2 %v3793_v58  ;;  %2537 = vmatpush.bf16.msra.mxu3 %v3921_v29  ;;  %v3541_v49 = vor.u32 %v4226_v46, %v3538_v47  ;;  %v3858_v50 = vld [vmem:[#allocation10 + $0x2b0] sm:$0xf0]  ;;  %v4342_v58 = vld [vmem:[#allocation10 + $0x3c4] sm:$0xf]  ;;  %v3941_v29 = vor.u32 %v4326_v25, %v3938_v27 }
 0x261   :  { %v3861_v15 = vor.u32 %v4306_v48, %v3858_v50  ;;  %v4005_v54 = vor.u32 %v4342_v58, %v4002_v53  ;;  %v4253_v50 = vld [vmem:[#allocation10 + $0xf4] sm:$0xf0] }
 0x263   :  { %2496 = vmatpush.bf16.msra.mxu0 %v3521_v55  ;;  %2510 = vmatpush.bf16.msra.mxu1 %v3649_v56  ;;  %v4222_v55 = vld [vmem:[#allocation10 + $0x4] sm:$0xf]  ;;  %v3522_v56 = vld [vmem:[#allocation10 + $0x10] sm:$0xf0] }
 0x264   :  { %2524 = vmatpush.bf16.msra.mxu2 %v3777_v17  ;;  %2538 = vmatpush.bf16.msra.mxu3 %v3905_v42  ;;  %v3525_v60 = vor.u32 %v4222_v55, %v3522_v56  ;;  %v4330_v17 = vld [vmem:[#allocation10 + $0x364] sm:$0xf]  ;;  %v3906_v42 = vld [vmem:[#allocation10 + $0x310] sm:$0xf0]  ;;  %v3624_v55 = vld [vmem:[#allocation10 + $0xc8] sm:$0xf] }
 0x265   :  { %v3957_v21 = vor.u32 %v4330_v17, %v3954_v20  ;;  %v4249_v56 = vld [vmem:[#allocation10 + $0xd4] sm:$0xf0] }
 0x266   :  { %v4241_v17 = vld [vmem:[#allocation10 + $0x94] sm:$0xf0] }
 0x267   :  { %2545 = vmatpush.bf16.msrb.mxu0 %v3637_v57  ;;  %2559 = vmatpush.bf16.msrb.mxu1 %v3765_v61  ;;  %v4302_v57 = vld [vmem:[#allocation10 + $0x284] sm:$0xf]  ;;  %v3842_v61 = vld [vmem:[#allocation10 + $0x290] sm:$0xf0] }
 0x268   :  { %2573 = vmatpush.bf16.msrb.mxu2 %v3893_v28  ;;  %2587 = vmatpush.bf16.msrb.mxu3 %v4021_v33  ;;  %v3845_v62 = vor.u32 %v4302_v57, %v3842_v61  ;;  %v4681_v28 = vld [vmem:[#allocation8] sm:$0xf] }
 0x269   :  { %v1259_v36 = vperm.slane %v4681_v28, 0  ;;  %v1262_v20 = vperm.slane %v4681_v28, 3 }
 0x26b   :  { %2546 = vmatpush.bf16.msrb.mxu0 %v3621_v3  ;;  %2560 = vmatpush.bf16.msrb.mxu1 %v3749_v4  ;;  %v3669_v3 = vor.u32 %v4258_v63, %v3666_v2  ;;  %v4338_v4 = vld [vmem:[#allocation10 + $0x3a4] sm:$0xf]  ;;  %v1261_v63 = vperm.slane %v4681_v28, 2 }
 0x26c   :  { %2574 = vmatpush.bf16.msrb.mxu2 %v3877_v26  ;;  %2588 = vmatpush.bf16.msrb.mxu3 %v4005_v54  ;;  %v3989_v6 = vor.u32 %v4338_v4, %v3986_v5  ;;  %v4318_v26 = vld [vmem:[#allocation10 + $0x304] sm:$0xf]  ;;  %v3768_v4 = vld [vmem:[#allocation10 + $0x1e8] sm:$0xf]  ;;  %v4285_v5 = vld [vmem:[#allocation10 + $0x1f4] sm:$0xf0] }
 0x26d   :  { %v3909_v43 = vor.u32 %v4318_v26, %v3906_v42  ;;  %v3720_v26 = vld [vmem:[#allocation10 + $0x188] sm:$0xf]  ;;  %v4273_v42 = vld [vmem:[#allocation10 + $0x194] sm:$0xf0] }
 0x26f   :  { %2547 = vmatpush.bf16.msrb.mxu0 %v3605_v7  ;;  %2561 = vmatpush.bf16.msrb.mxu1 %v3733_v13  ;;  %v4298_v7 = vld [vmem:[#allocation10 + $0x264] sm:$0xf] }
 0x270   :  { %2575 = vmatpush.bf16.msrb.mxu2 %v3861_v15  ;;  %v3829_v9 = vor.u32 %v4298_v7, %v3826_v18  ;;  %2589 = vmatpush.bf16.msrb.mxu3 %v3989_v6  ;;  %v4294_v13 = vld [vmem:[#allocation10 + $0x244] sm:$0xf]  ;;  %v3608_v6 = vld [vmem:[#allocation10 + $0xa8] sm:$0xf]  ;;  %v4245_v7 = vld [vmem:[#allocation10 + $0xb4] sm:$0xf0] }
 0x271   :  { %v3813_v16 = vor.u32 %v4294_v13, %v3810_v14 }
 0x273   :  { %2548 = vmatpush.bf16.msrb.mxu0 %v3589_v19  ;;  %2562 = vmatpush.bf16.msrb.mxu1 %v3717_v32  ;;  %v4254_v19 = vld [vmem:[#allocation10 + $0x104] sm:$0xf] }
 0x274   :  { %2576 = vmatpush.bf16.msrb.mxu2 %v3845_v62  ;;  %v3653_v11 = vor.u32 %v4254_v19, %v3650_v0  ;;  %2590 = vmatpush.bf16.msrb.mxu3 %v3973_v12  ;;  %v3769_v0 = vor.u32 %v4285_v5, %v3768_v4  ;;  %v4281_v12 = vld [vmem:[#allocation10 + $0x1d4] sm:$0xf0]  ;;  %v3688_v4 = vld [vmem:[#allocation10 + $0x148] sm:$0xf] }
 0x277   :  { %2549 = vmatpush.bf16.msrb.mxu0 %v3573_v23  ;;  %2563 = vmatpush.bf16.msrb.mxu1 %v3701_v44  ;;  %v3794_v23 = vld [vmem:[#allocation10 + $0x230] sm:$0xf0]  ;;  %v1260_v44 = vperm.slane %v4681_v28, 1 }
 0x278   :  { %2577 = vmatpush.bf16.msrb.mxu2 %v3829_v9  ;;  %2591 = vmatpush.bf16.msrb.mxu3 %v3957_v21  ;;  %v3797_v24 = vor.u32 %v4290_v22, %v3794_v23 }
 0x27b   :  { %2550 = vmatpush.bf16.msrb.mxu0 %v3557_v37  ;;  %2564 = vmatpush.bf16.msrb.mxu1 %v3685_v52  ;;  %v4322_v37 = vld [vmem:[#allocation10 + $0x324] sm:$0xf] }
 0x27c   :  { %2578 = vmatpush.bf16.msrb.mxu2 %v3813_v16  ;;  %2592 = vmatpush.bf16.msrb.mxu3 %v3941_v29  ;;  %v3925_v39 = vor.u32 %v4322_v37, %v3922_v38  ;;  %v3592_v16 = vld [vmem:[#allocation10 + $0x88] sm:$0xf]  ;;  %v4237_v37 = vld [vmem:[#allocation10 + $0x74] sm:$0xf0] }
 0x27d   :  { %v3593_v27 = vor.u32 %v4241_v17, %v3592_v16  ;;  %v3736_v29 = vld [vmem:[#allocation10 + $0x1a8] sm:$0xf]  ;;  %v4251_v16 = vld [vmem:[#allocation10 + $0xec] sm:$0xf]  ;;  %v3642_v17 = vld [vmem:[#allocation10 + $0xf8] sm:$0xf0] }
 0x27f   :  { %2551 = vmatpush.bf16.msrb.mxu0 %v3541_v49  ;;  %2565 = vmatpush.bf16.msrb.mxu1 %v3669_v3  ;;  %v3640_v49 = vld [vmem:[#allocation10 + $0xe8] sm:$0xf]  ;;  %v3625_v3 = vor.u32 %v4249_v56, %v3624_v55 }
 0x280   :  { %2579 = vmatpush.bf16.msrb.mxu2 %v3797_v24  ;;  %2593 = vmatpush.bf16.msrb.mxu3 %v3925_v39  ;;  %v3641_v58 = vor.u32 %v4253_v50, %v3640_v49  ;;  %v3753_v24 = vor.u32 %v4281_v12, %v3752_v1  ;;  %v3737_v39 = vor.u32 %v4277_v30, %v3736_v29  ;;  %v3864_v56 = vld [vmem:[#allocation10 + $0x2a8] sm:$0xf]  ;;  %v4225_v12 = vld [vmem:[#allocation10 + $0x14] sm:$0xf0] }
 0x281   :  { %v3721_v50 = vor.u32 %v4273_v42, %v3720_v26  ;;  %v3528_v1 = vld [vmem:[#allocation10 + $0x8] sm:$0xf]  ;;  %v4301_v30 = vld [vmem:[#allocation10 + $0x274] sm:$0xf0]  ;;  %v3770_v26 = vld [vmem:[#allocation10 + $0x1f8] sm:$0xf0] }
 0x282   :  { %v3832_v29 = vld [vmem:[#allocation10 + $0x268] sm:$0xf] }
 0x283   :  { %2552 = vmatpush.bf16.msrb.mxu0 %v3525_v60  ;;  %2566 = vmatpush.bf16.msrb.mxu1 %v3653_v11  ;;  %v3609_v11 = vor.u32 %v4245_v7, %v3608_v6  ;;  %v4265_v7 = vld [vmem:[#allocation10 + $0x154] sm:$0xf0] }
 0x284   :  { %2580 = vmatpush.bf16.msrb.mxu2 %v3781_v35  ;;  %2594 = vmatpush.bf16.msrb.mxu3 %v3909_v43 }
 0x2c2   :  { %v1596_v32 = vpop.f32.mrf.mxu0  ;;  %v1610_v34 = vpop.f32.mrf.mxu1 }
 0x2c3   :  { %v1597_v40 = vadd.f32 %v1596_v32, %v1259_v36  ;;  %v3896_v32 = vld [vmem:[#allocation10 + $0x2e8] sm:$0xf] }
 0x2c5   :  { %v1611_v46 = vadd.f32 %v1610_v34, %v1597_v40  ;;  %v4317_v34 = vld [vmem:[#allocation10 + $0x2f4] sm:$0xf0] }
 0x2c6   :  { %v3897_v40 = vor.u32 %v4317_v34, %v3896_v32  ;;  %v4247_v34 = vld [vmem:[#allocation10 + $0xcc] sm:$0xf] }
 0x2c7   :  { %v1699_v51 = vmax.f32 %v1611_v46, 0.0 }
 0x2c9   :  { %v1624_v41 = vpop.f32.mrf.mxu2  ;;  %v1638_v8 = vpop.f32.mrf.mxu3 }
 0x2ca   :  { %v1598_v45 = vpop.f32.mrf.mxu0  ;;  %v1612_v33 = vpop.f32.mrf.mxu1  ;;  %v1625_v15 = vadd.f32 %v1624_v41, %v1260_v44 }
 0x2cb   :  { %v1599_v47 = vadd.f32 %v1598_v45, %v1259_v36  ;;  %v3576_v36 = vld [vmem:[#allocation10 + $0x68] sm:$0xf]  ;;  %v4313_v45 = vld [vmem:[#allocation10 + $0x2d4] sm:$0xf0] }
 0x2cc   :  { %v1639_v57 = vadd.f32 %v1638_v8, %v1625_v15  ;;  %v3577_v43 = vor.u32 %v4237_v37, %v3576_v36  ;;  %v3704_v15 = vld [vmem:[#allocation10 + $0x168] sm:$0xf]  ;;  %v4257_v37 = vld [vmem:[#allocation10 + $0x114] sm:$0xf0] }
 0x2cd   :  { %v1613_v48 = vadd.f32 %v1612_v33, %v1599_v47  ;;  %v3560_v47 = vld [vmem:[#allocation10 + $0x48] sm:$0xf] }
 0x2ce   :  { %v1700_v18 = vmax.f32 %v1639_v57, 0.0  ;;  %v4309_v57 = vld [vmem:[#allocation10 + $0x2b4] sm:$0xf0]  ;;  %v3656_v36 = vld [vmem:[#allocation10 + $0x108] sm:$0xf] }
 0x2cf   :  { %v1703_v59 = vmax.f32 %v1613_v48, 0.0  ;;  %v4233_v48 = vld [vmem:[#allocation10 + $0x54] sm:$0xf0]  ;;  %v3865_v6 = vor.u32 %v4309_v57, %v3864_v56  ;;  %v3594_v56 = vld [vmem:[#allocation10 + $0x98] sm:$0xf0] }
 0x2d0   :  { %v3561_v55 = vor.u32 %v4233_v48, %v3560_v47  ;;  %v3960_v48 = vld [vmem:[#allocation10 + $0x368] sm:$0xf] }
 0x2d1   :  { %v4685_v52 = vpack.c.bf16 %v1703_v59, %v1699_v51  ;;  %v1626_v53 = vpop.f32.mrf.mxu2  ;;  %v1640_v54 = vpop.f32.mrf.mxu3 }
 0x2d2   :  { %v1627_v60 = vadd.f32 %v1626_v53, %v1260_v44  ;;  %v1652_v61 = vpop.f32.mrf.mxu0  ;;  %v1666_v62 = vpop.f32.mrf.mxu1  ;;  %v3880_v44 = vld [vmem:[#allocation10 + $0x2c8] sm:$0xf] }
 0x2d3   :  { %2497 = vmatmul.bf16.vlgmr.msra.gmra.mxu0 %v4685_v52  ;;  %v1653_v19 = vadd.f32 %v1652_v61, %v1261_v63  ;;  %v3881_v59 = vor.u32 %v4313_v45, %v3880_v44  ;;  %v4024_v53 = vld [vmem:[#allocation10 + $0x3e8] sm:$0xf]  ;;  %v3657_v44 = vor.u32 %v4257_v37, %v3656_v36 }
 0x2d4   :  { %v1641_v2 = vadd.f32 %v1640_v54, %v1627_v60  ;;  %2601 = vmatpush.bf16.msra.mxu0 %v3641_v58  ;;  %v4269_v58 = vld [vmem:[#allocation10 + $0x174] sm:$0xf0] }
 0x2d5   :  { %v1667_v22 = vadd.f32 %v1666_v62, %v1653_v19  ;;  %v4349_v54 = vld [vmem:[#allocation10 + $0x3f4] sm:$0xf0]  ;;  %v3544_v62 = vld [vmem:[#allocation10 + $0x28] sm:$0xf] }
 0x2d6   :  { %v1704_v9 = vmax.f32 %v1641_v2, 0.0  ;;  %v3705_v2 = vor.u32 %v4269_v58, %v3704_v15  ;;  %v4279_v15 = vld [vmem:[#allocation10 + $0x1cc] sm:$0xf]  ;;  %v3800_v58 = vld [vmem:[#allocation10 + $0x228] sm:$0xf] }
 0x2d7   :  { %v1701_v38 = vmax.f32 %v1667_v22, 0.0  ;;  %v4261_v22 = vld [vmem:[#allocation10 + $0x134] sm:$0xf0] }
 0x2d8   :  { %v4689_v10 = vpack.c.bf16 %v1704_v9, %v1700_v18  ;;  %2602 = vmatpush.bf16.msra.mxu0 %v3625_v3  ;;  %v4025_v3 = vor.u32 %v4349_v54, %v4024_v53  ;;  %v4008_v18 = vld [vmem:[#allocation10 + $0x3c8] sm:$0xf]  ;;  %v4345_v9 = vld [vmem:[#allocation10 + $0x3d4] sm:$0xf0] }
 0x2d9   :  { %v1680_v13 = vpop.f32.mrf.mxu2  ;;  %v1694_v14 = vpop.f32.mrf.mxu3  ;;  %v4293_v53 = vld [vmem:[#allocation10 + $0x234] sm:$0xf0] }
 0x2da   :  { %2511 = vmatmul.bf16.vlgmr.msra.gmra.mxu1 %v4689_v10  ;;  %v1654_v21 = vpop.f32.mrf.mxu0  ;;  %v1668_v25 = vpop.f32.mrf.mxu1  ;;  %v1681_v35 = vadd.f32 %v1680_v13, %v1262_v20  ;;  %v3689_v13 = vor.u32 %v4265_v7, %v3688_v4  ;;  %v3784_v4 = vld [vmem:[#allocation10 + $0x208] sm:$0xf]  ;;  %v4235_v7 = vld [vmem:[#allocation10 + $0x6c] sm:$0xf] }
 0x2db   :  { %2615 = vmatpush.bf16.msra.mxu1 %v3769_v0  ;;  %v1655_v23 = vadd.f32 %v1654_v21, %v1261_v63  ;;  %v4229_v63 = vld [vmem:[#allocation10 + $0x34] sm:$0xf0]  ;;  %v3848_v0 = vld [vmem:[#allocation10 + $0x288] sm:$0xf] }
 0x2dc   :  { %2603 = vmatpush.bf16.msra.mxu0 %v3609_v11  ;;  %v1695_v33 = vadd.f32 %v1694_v14, %v1681_v35  ;;  %v3545_v19 = vor.u32 %v4229_v63, %v3544_v62  ;;  %v4305_v11 = vld [vmem:[#allocation10 + $0x294] sm:$0xf0]  ;;  %v4009_v14 = vor.u32 %v4345_v9, %v4008_v18  ;;  %v3626_v35 = vld [vmem:[#allocation10 + $0xd8] sm:$0xf0]  ;;  %v3801_v62 = vor.u32 %v4293_v53, %v3800_v58  ;;  %v4275_v63 = vld [vmem:[#allocation10 + $0x1ac] sm:$0xf] }
 0x2dd   :  { %v1669_v31 = vadd.f32 %v1668_v25, %v1655_v23  ;;  %v3849_v21 = vor.u32 %v4305_v11, %v3848_v0  ;;  %v3992_v23 = vld [vmem:[#allocation10 + $0x3a8] sm:$0xf]  ;;  %v3529_v25 = vor.u32 %v4225_v12, %v3528_v1  ;;  %v3629_v42 = vor.u32 %v4247_v34, %v3626_v35  ;;  %v3578_v9 = vld [vmem:[#allocation10 + $0x78] sm:$0xf0]  ;;  %v4325_v12 = vld [vmem:[#allocation10 + $0x334] sm:$0xf0] }
 0x2de   :  { %v1702_v60 = vmax.f32 %v1695_v33, 0.0  ;;  %v4243_v33 = vld [vmem:[#allocation10 + $0xac] sm:$0xf]  ;;  %v3898_v0 = vld [vmem:[#allocation10 + $0x2f8] sm:$0xf0] }
 0x2df   :  { %v1705_v28 = vmax.f32 %v1669_v31, 0.0  ;;  %2616 = vmatpush.bf16.msra.mxu1 %v3753_v24  ;;  %v4341_v24 = vld [vmem:[#allocation10 + $0x3b4] sm:$0xf0]  ;;  %v3928_v1 = vld [vmem:[#allocation10 + $0x328] sm:$0xf] }
 0x2e0   :  { %2604 = vmatpush.bf16.msra.mxu0 %v3593_v27  ;;  %v3645_v27 = vor.u32 %v4251_v16, %v3642_v17  ;;  %v3993_v32 = vor.u32 %v4341_v24, %v3992_v23  ;;  %v3722_v16 = vld [vmem:[#allocation10 + $0x198] sm:$0xf0]  ;;  %v3581_v17 = vor.u32 %v4235_v7, %v3578_v9  ;;  %v4311_v24 = vld [vmem:[#allocation10 + $0x2cc] sm:$0xf] }
 0x2e1   :  { %v4693_v41 = vpack.c.bf16 %v1705_v28, %v1701_v38  ;;  %v1682_v8 = vpop.f32.mrf.mxu2  ;;  %v1696_v49 = vpop.f32.mrf.mxu3  ;;  %v3976_v38 = vld [vmem:[#allocation10 + $0x388] sm:$0xf]  ;;  %v4337_v28 = vld [vmem:[#allocation10 + $0x394] sm:$0xf0]  ;;  %v3562_v23 = vld [vmem:[#allocation10 + $0x58] sm:$0xf0] }
 0x2e2   :  { %v1683_v46 = vadd.f32 %v1682_v8, %v1262_v20  ;;  %v3672_v20 = vld [vmem:[#allocation10 + $0x128] sm:$0xf]  ;;  %v3977_v45 = vor.u32 %v4337_v28, %v3976_v38  ;;  %v4347_v34 = vld [vmem:[#allocation10 + $0x3ec] sm:$0xf]  ;;  %v4026_v35 = vld [vmem:[#allocation10 + $0x3f8] sm:$0xf0] }
 0x2e3   :  { %2617 = vmatpush.bf16.msra.mxu1 %v3737_v39  ;;  %2525 = vmatmul.bf16.vlgmr.msra.gmra.mxu2 %v4693_v41  ;;  %v3673_v31 = vor.u32 %v4261_v22, %v3672_v20  ;;  %v3833_v39 = vor.u32 %v4301_v30, %v3832_v29  ;;  %v3816_v8 = vld [vmem:[#allocation10 + $0x248] sm:$0xf]  ;;  %v3929_v22 = vor.u32 %v4325_v12, %v3928_v1  ;;  %v4321_v30 = vld [vmem:[#allocation10 + $0x314] sm:$0xf0]  ;;  %v4227_v38 = vld [vmem:[#allocation10 + $0x2c] sm:$0xf] }
 0x2e4   :  { %v1697_v51 = vadd.f32 %v1696_v49, %v1683_v46  ;;  %2553 = vmatmul.bf16.vlgmr.msrb.gmra.mxu0 %v4685_v52  ;;  %2629 = vmatpush.bf16.msra.mxu2 %v3897_v40  ;;  %v4283_v40 = vld [vmem:[#allocation10 + $0x1ec] sm:$0xf]  ;;  %v3610_v46 = vld [vmem:[#allocation10 + $0xb8] sm:$0xf0]  ;;  %v4333_v49 = vld [vmem:[#allocation10 + $0x374] sm:$0xf0] }
 0x2e5   :  { %2605 = vmatpush.bf16.msra.mxu0 %v3577_v43  ;;  %v4297_v43 = vld [vmem:[#allocation10 + $0x254] sm:$0xf0]  ;;  %v3773_v47 = vor.u32 %v4283_v40, %v3770_v26  ;;  %v3961_v54 = vor.u32 %v4333_v49, %v3960_v48  ;;  %v3912_v29 = vld [vmem:[#allocation10 + $0x308] sm:$0xf]  ;;  %v4307_v40 = vld [vmem:[#allocation10 + $0x2ac] sm:$0xf] }
 0x2e6   :  { %v1706_v61 = vmax.f32 %v1697_v51, 0.0  ;;  %v3754_v51 = vld [vmem:[#allocation10 + $0x1d8] sm:$0xf0]  ;;  %v3913_v28 = vor.u32 %v4321_v30, %v3912_v29  ;;  %v4223_v48 = vld [vmem:[#allocation10 + $0xc] sm:$0xf] }
 0x2e7   :  { %2618 = vmatpush.bf16.msra.mxu1 %v3721_v50  ;;  %v3817_v50 = vor.u32 %v4297_v43, %v3816_v8  ;;  %v3757_v57 = vor.u32 %v4279_v15, %v3754_v51  ;;  %v3866_v26 = vld [vmem:[#allocation10 + $0x2b8] sm:$0xf0]  ;;  %v4029_v8 = vor.u32 %v4347_v34, %v4026_v35  ;;  %v4263_v43 = vld [vmem:[#allocation10 + $0x14c] sm:$0xf] }
 0x2e8   :  { %v4697_v5 = vpack.c.bf16 %v1706_v61, %v1702_v60  ;;  %2630 = vmatpush.bf16.msra.mxu2 %v3881_v59  ;;  %v3613_v59 = vor.u32 %v4243_v33, %v3610_v46  ;;  %v3944_v60 = vld [vmem:[#allocation10 + $0x348] sm:$0xf]  ;;  %v4329_v61 = vld [vmem:[#allocation10 + $0x354] sm:$0xf0]  ;;  %v4010_v33 = vld [vmem:[#allocation10 + $0x3d8] sm:$0xf0] }
 0x2e9   :  { %2606 = vmatpush.bf16.msra.mxu0 %v3561_v55  ;;  %v4239_v55 = vld [vmem:[#allocation10 + $0x8c] sm:$0xf]  ;;  %v3945_v18 = vor.u32 %v4329_v61, %v3944_v60  ;;  %v3530_v49 = vld [vmem:[#allocation10 + $0x18] sm:$0xf0] }
 0x2ea   :  { %2539 = vmatmul.bf16.vlgmr.msra.gmra.mxu3 %v4697_v5  ;;  %2567 = vmatmul.bf16.vlgmr.msrb.gmra.mxu1 %v4689_v10  ;;  %v3850_v15 = vld [vmem:[#allocation10 + $0x298] sm:$0xf0]  ;;  %v4259_v58 = vld [vmem:[#allocation10 + $0x12c] sm:$0xf] }
 0x2eb   :  { %2619 = vmatpush.bf16.msra.mxu1 %v3705_v2  ;;  %2643 = vmatpush.bf16.msra.mxu3 %v4025_v3  ;;  %v3738_v2 = vld [vmem:[#allocation10 + $0x1b8] sm:$0xf0]  ;;  %v3597_v3 = vor.u32 %v4239_v55, %v3594_v56  ;;  %v3533_v56 = vor.u32 %v4223_v48, %v3530_v49  ;;  %v4299_v60 = vld [vmem:[#allocation10 + $0x26c] sm:$0xf] }
 0x2ec   :  { %2631 = vmatpush.bf16.msra.mxu2 %v3865_v6  ;;  %v4289_v6 = vld [vmem:[#allocation10 + $0x214] sm:$0xf0]  ;;  %v3741_v11 = vor.u32 %v4275_v63, %v3738_v2  ;;  %v3674_v53 = vld [vmem:[#allocation10 + $0x138] sm:$0xf0]  ;;  %v4255_v2 = vld [vmem:[#allocation10 + $0x10c] sm:$0xf] }
 0x2ed   :  { %2607 = vmatpush.bf16.msra.mxu0 %v3545_v19  ;;  %v4315_v19 = vld [vmem:[#allocation10 + $0x2ec] sm:$0xf]  ;;  %v3994_v55 = vld [vmem:[#allocation10 + $0x3b8] sm:$0xf0] }
 0x2ee   :  { %v3901_v20 = vor.u32 %v4315_v19, %v3898_v0  ;;  %v3834_v61 = vld [vmem:[#allocation10 + $0x278] sm:$0xf0]  ;;  %v4319_v30 = vld [vmem:[#allocation10 + $0x30c] sm:$0xf] }
 0x2ef   :  { %2620 = vmatpush.bf16.msra.mxu1 %v3689_v13  ;;  %2644 = vmatpush.bf16.msra.mxu3 %v4009_v14  ;;  %v3785_v13 = vor.u32 %v4289_v6, %v3784_v4  ;;  %v4271_v14 = vld [vmem:[#allocation10 + $0x18c] sm:$0xf]  ;;  %v3978_v6 = vld [vmem:[#allocation10 + $0x398] sm:$0xf0]  ;;  %v3837_v7 = vor.u32 %v4299_v60, %v3834_v61 }
 0x2f0   :  { %2632 = vmatpush.bf16.msra.mxu2 %v3849_v21  ;;  %v4231_v21 = vld [vmem:[#allocation10 + $0x4c] sm:$0xf]  ;;  %v3818_v9 = vld [vmem:[#allocation10 + $0x258] sm:$0xf0] }
 0x2f1   :  { %2608 = vmatpush.bf16.msra.mxu0 %v3529_v25  ;;  %v3882_v25 = vld [vmem:[#allocation10 + $0x2d8] sm:$0xf0]  ;;  %v3565_v36 = vor.u32 %v4231_v21, %v3562_v23  ;;  %v4335_v4 = vld [vmem:[#allocation10 + $0x38c] sm:$0xf] }
 0x2f2   :  { %v3885_v37 = vor.u32 %v4311_v24, %v3882_v25  ;;  %v3981_v0 = vor.u32 %v4335_v4, %v3978_v6  ;;  %v3962_v1 = vld [vmem:[#allocation10 + $0x378] sm:$0xf0] }
 0x2f3   :  { %2621 = vmatpush.bf16.msra.mxu1 %v3673_v31  ;;  %2645 = vmatpush.bf16.msra.mxu3 %v3993_v32  ;;  %v4267_v31 = vld [vmem:[#allocation10 + $0x16c] sm:$0xf]  ;;  %v3706_v32 = vld [vmem:[#allocation10 + $0x178] sm:$0xf0] }
 0x2f4   :  { %2581 = vmatmul.bf16.vlgmr.msrb.gmra.mxu2 %v4693_v41  ;;  %2609 = vmatmul.bf16.vlgmr.msra.gmra.mxu0 %v4685_v52  ;;  %v3786_v23 = vld [vmem:[#allocation10 + $0x218] sm:$0xf0] }
 0x2f5   :  { %2657 = vmatpush.bf16.msrb.mxu0 %v3645_v27  ;;  %2633 = vmatpush.bf16.msra.mxu2 %v3833_v39  ;;  %v3725_v27 = vor.u32 %v4271_v14, %v3722_v16  ;;  %v3546_v39 = vld [vmem:[#allocation10 + $0x38] sm:$0xf0] }
 0x2f6   :  { %v3549_v46 = vor.u32 %v4227_v38, %v3546_v39  ;;  %v3802_v14 = vld [vmem:[#allocation10 + $0x238] sm:$0xf0] }
 0x2f7   :  { %2622 = vmatpush.bf16.msra.mxu1 %v3657_v44  ;;  %2646 = vmatpush.bf16.msra.mxu3 %v3977_v45  ;;  %v3690_v44 = vld [vmem:[#allocation10 + $0x158] sm:$0xf0]  ;;  %v4343_v45 = vld [vmem:[#allocation10 + $0x3cc] sm:$0xf] }
 0x2f8   :  { %v3693_v51 = vor.u32 %v4263_v43, %v3690_v44  ;;  %v3930_v25 = vld [vmem:[#allocation10 + $0x338] sm:$0xf0] }
 0x2f9   :  { %2658 = vmatpush.bf16.msrb.mxu0 %v3629_v42  ;;  %2634 = vmatpush.bf16.msra.mxu2 %v3817_v50  ;;  %v3709_v42 = vor.u32 %v4267_v31, %v3706_v32  ;;  %v4303_v50 = vld [vmem:[#allocation10 + $0x28c] sm:$0xf]  ;;  %v3914_v31 = vld [vmem:[#allocation10 + $0x318] sm:$0xf0] }
 0x2fa   :  { %2595 = vmatmul.bf16.vlgmr.msrb.gmra.mxu3 %v4697_v5  ;;  %2623 = vmatmul.bf16.vlgmr.msra.gmra.mxu1 %v4689_v10  ;;  %v3917_v32 = vor.u32 %v4319_v30, %v3914_v31  ;;  %v4714_v35 = vld [vmem:[%s4731_s5] sm:$0xf]  ;;  %s4549_s5 = smov [#allocation11]  }
 0x2fb   :  { %2671 = vmatpush.bf16.msrb.mxu1 %v3773_v47  ;;  %2647 = vmatpush.bf16.msra.mxu3 %v3961_v54  ;;  %v3869_v47 = vor.u32 %v4307_v40, %v3866_v26  ;;  %v4339_v54 = vld [vmem:[#allocation10 + $0x3ac] sm:$0xf]  ;;  %s2733_s24 = sshll.u32 %s4549_s5, 4  ;;  %s2734_s24 = int_to_ptr.vmem [resolvable:$true] %s2733_s24 }
 0x2fc   :  { %v3997_v63 = vor.u32 %v4339_v54, %v3994_v55 }
 0x2fd   :  { %2659 = vmatpush.bf16.msrb.mxu0 %v3613_v59  ;;  %2635 = vmatpush.bf16.msra.mxu2 %v3801_v62  ;;  %v4013_v59 = vor.u32 %v4343_v45, %v4010_v33  ;;  %v3677_v62 = vor.u32 %v4259_v58, %v3674_v53 }
 0x2ff   :  { %2672 = vmatpush.bf16.msrb.mxu1 %v3757_v57  ;;  %2648 = vmatpush.bf16.msra.mxu3 %v3945_v18  ;;  %v3853_v57 = vor.u32 %v4303_v50, %v3850_v15  ;;  %v4295_v18 = vld [vmem:[#allocation10 + $0x24c] sm:$0xf] }
 0x300   :  { %v3821_v12 = vor.u32 %v4295_v18, %v3818_v9 }
 0x301   :  { %2660 = vmatpush.bf16.msrb.mxu0 %v3597_v3  ;;  %2636 = vmatpush.bf16.msra.mxu2 %v3785_v13  ;;  %v3658_v3 = vld [vmem:[#allocation10 + $0x118] sm:$0xf0]  ;;  %v4291_v13 = vld [vmem:[#allocation10 + $0x22c] sm:$0xf] }
 0x302   :  { %v3661_v19 = vor.u32 %v4255_v2, %v3658_v3  ;;  %v3805_v21 = vor.u32 %v4291_v13, %v3802_v14  ;;  %v1843_v3 = vperm.slane %v4714_v35, 2 }
 0x303   :  { %2673 = vmatpush.bf16.msrb.mxu1 %v3741_v11  ;;  %2649 = vmatpush.bf16.msra.mxu3 %v3929_v22  ;;  %v4331_v11 = vld [vmem:[#allocation10 + $0x36c] sm:$0xf] }
 0x304   :  { %2637 = vmatmul.bf16.vlgmr.msra.gmra.mxu2 %v4693_v41  ;;  %v3965_v16 = vor.u32 %v4331_v11, %v3962_v1  ;;  %v4287_v22 = vld [vmem:[#allocation10 + $0x20c] sm:$0xf] }
 0x305   :  { %2661 = vmatpush.bf16.msrb.mxu0 %v3581_v17  ;;  %2685 = vmatpush.bf16.msrb.mxu2 %v3901_v20  ;;  %v4327_v17 = vld [vmem:[#allocation10 + $0x34c] sm:$0xf]  ;;  %v3946_v20 = vld [vmem:[#allocation10 + $0x358] sm:$0xf0] }
 0x306   :  { %v3949_v24 = vor.u32 %v4327_v17, %v3946_v20 }
 0x307   :  { %2674 = vmatpush.bf16.msrb.mxu1 %v3725_v27  ;;  %2650 = vmatpush.bf16.msra.mxu3 %v3913_v28  ;;  %v3789_v27 = vor.u32 %v4287_v22, %v3786_v23 }
 0x309   :  { %2662 = vmatpush.bf16.msrb.mxu0 %v3565_v36  ;;  %2686 = vmatpush.bf16.msrb.mxu2 %v3885_v37  ;;  %v1841_v36 = vperm.slane %v4714_v35, 0 }
 0x30a   :  { %2651 = vmatmul.bf16.vlgmr.msra.gmra.mxu3 %v4697_v5 }
 0x30b   :  { %2675 = vmatpush.bf16.msrb.mxu1 %v3709_v42  ;;  %2699 = vmatpush.bf16.msrb.mxu3 %v4029_v8 }
 0x30d   :  { %2663 = vmatpush.bf16.msrb.mxu0 %v3549_v46  ;;  %2687 = vmatpush.bf16.msrb.mxu2 %v3869_v47  ;;  %v1842_v46 = vperm.slane %v4714_v35, 1 }
 0x30f   :  { %2676 = vmatpush.bf16.msrb.mxu1 %v3693_v51  ;;  %2700 = vmatpush.bf16.msrb.mxu3 %v4013_v59 }
 0x311   :  { %2664 = vmatpush.bf16.msrb.mxu0 %v3533_v56  ;;  %2688 = vmatpush.bf16.msrb.mxu2 %v3853_v57 }
 0x313   :  { %2677 = vmatpush.bf16.msrb.mxu1 %v3677_v62  ;;  %2701 = vmatpush.bf16.msrb.mxu3 %v3997_v63 }
 0x314   :  { %2665 = vmatmul.bf16.vlgmr.msrb.gmra.mxu0 %v4685_v52  ;;  %v4323_v52 = vld [vmem:[#allocation10 + $0x32c] sm:$0xf] }
 0x315   :  { %2689 = vmatpush.bf16.msrb.mxu2 %v3837_v7  ;;  %v3933_v29 = vor.u32 %v4323_v52, %v3930_v25 }
 0x317   :  { %2678 = vmatpush.bf16.msrb.mxu1 %v3661_v19  ;;  %2702 = vmatpush.bf16.msrb.mxu3 %v3981_v0 }
 0x319   :  { %2690 = vmatpush.bf16.msrb.mxu2 %v3821_v12 }
 0x31a   :  { %2679 = vmatmul.bf16.vlgmr.msrb.gmra.mxu1 %v4689_v10 }
 0x31b   :  { %2703 = vmatpush.bf16.msrb.mxu3 %v3965_v16 }
 0x31d   :  { %2691 = vmatpush.bf16.msrb.mxu2 %v3805_v21 }
 0x31f   :  { %2704 = vmatpush.bf16.msrb.mxu3 %v3949_v24 }
 0x321   :  { %2692 = vmatpush.bf16.msrb.mxu2 %v3789_v27  ;;  %v1844_v27 = vperm.slane %v4714_v35, 3 }
 0x323   :  { %2705 = vmatpush.bf16.msrb.mxu3 %v3933_v29 }
 0x324   :  { %2693 = vmatmul.bf16.vlgmr.msrb.gmra.mxu2 %v4693_v41 }
 0x327   :  { %2706 = vmatpush.bf16.msrb.mxu3 %v3917_v32 }
 0x32a   :  { %2707 = vmatmul.bf16.vlgmr.msrb.gmra.mxu3 %v4697_v5 }
 0x350   :  { %v2498_v10 = vpop.f32.mrf.mxu0 }
 0x351   :  { %v2499_v28 = vadd.f32 %v2498_v10, %v1841_v36 }
 0x357   :  { %v2512_v34 = vpop.f32.mrf.mxu1 }
 0x358   :  { %v2500_v37 = vpop.f32.mrf.mxu0  ;;  %v2513_v40 = vadd.f32 %v2512_v34, %v2499_v28 }
 0x359   :  { %v2501_v43 = vadd.f32 %v2500_v37, %v1841_v36 }
 0x35f   :  { %v2514_v39 = vpop.f32.mrf.mxu1 }
 0x360   :  { %v2515_v45 = vadd.f32 %v2514_v39, %v2501_v43 }
 0x361   :  { %v2554_v5 = vpop.f32.mrf.mxu0 }
 0x362   :  { %v2555_v15 = vadd.f32 %v2554_v5, %v1842_v46 }
 0x366   :  { %v2526_v38 = vpop.f32.mrf.mxu2 }
 0x367   :  { %v2527_v26 = vadd.f32 %v2526_v38, %v2513_v40  ;;  %v2568_v33 = vpop.f32.mrf.mxu1 }
 0x368   :  { %v2569_v59 = vadd.f32 %v2568_v33, %v2555_v15 }
 0x369   :  { %v2556_v58 = vpop.f32.mrf.mxu0 }
 0x36a   :  { %v2557_v60 = vadd.f32 %v2556_v58, %v1842_v46 }
 0x36d   :  { %v2540_v42 = vpop.f32.mrf.mxu3 }
 0x36e   :  { %v2541_v41 = vadd.f32 %v2540_v42, %v2527_v26  ;;  %v2528_v8 = vpop.f32.mrf.mxu2 }
 0x36f   :  { %v2529_v47 = vadd.f32 %v2528_v8, %v2515_v45  ;;  %v2570_v53 = vpop.f32.mrf.mxu1 }
 0x370   :  { %v2713_v44 = vmax.f32 %v2541_v41, 0.0  ;;  %v2571_v62 = vadd.f32 %v2570_v53, %v2557_v60 }
 0x371   :  { %v2610_v63 = vpop.f32.mrf.mxu0 }
 0x372   :  { %2721 = vst [vmem:[#allocation11] sm:$0xff] %v2713_v44  ;;  %v2611_v19 = vadd.f32 %v2610_v63, %v1843_v3 }
 0x375   :  { %v2542_v48 = vpop.f32.mrf.mxu3 }
 0x376   :  { %v2543_v49 = vadd.f32 %v2542_v48, %v2529_v47 }
 0x377   :  { %v2582_v50 = vpop.f32.mrf.mxu2  ;;  %v2624_v6 = vpop.f32.mrf.mxu1 }
 0x378   :  { %v2717_v51 = vmax.f32 %v2543_v49, 0.0  ;;  %v2583_v54 = vadd.f32 %v2582_v50, %v2569_v59  ;;  %v2625_v0 = vadd.f32 %v2624_v6, %v2611_v19 }
 0x379   :  { %v2612_v1 = vpop.f32.mrf.mxu0 }
 0x37a   :  { %2725 = vst [vmem:[#allocation11 + $0x20] sm:$0xff] %v2717_v51  ;;  %v2613_v16 = vadd.f32 %v2612_v1, %v1843_v3 }
 0x37d   :  { %v2596_v55 = vpop.f32.mrf.mxu3 }
 0x37e   :  { %v2597_v56 = vadd.f32 %v2596_v55, %v2583_v54 }
 0x37f   :  { %v2584_v57 = vpop.f32.mrf.mxu2  ;;  %v2626_v14 = vpop.f32.mrf.mxu1 }
 0x380   :  { %v2714_v61 = vmax.f32 %v2597_v56, 0.0  ;;  %v2585_v2 = vadd.f32 %v2584_v57, %v2571_v62  ;;  %v2627_v21 = vadd.f32 %v2626_v14, %v2613_v16 }
 0x382   :  { %2722 = vst [vmem:[#allocation11 + $0x8] sm:$0xff] %v2714_v61 }
 0x385   :  { %v2598_v4 = vpop.f32.mrf.mxu3 }
 0x386   :  { %v2599_v7 = vadd.f32 %v2598_v4, %v2585_v2 }
 0x387   :  { %v2638_v9 = vpop.f32.mrf.mxu2 }
 0x388   :  { %v2718_v18 = vmax.f32 %v2599_v7, 0.0  ;;  %v2639_v11 = vadd.f32 %v2638_v9, %v2625_v0 }
 0x38a   :  { %2726 = vst [vmem:[#allocation11 + $0x28] sm:$0xff] %v2718_v18 }
 0x38d   :  { %v2652_v12 = vpop.f32.mrf.mxu3 }
 0x38e   :  { %v2653_v13 = vadd.f32 %v2652_v12, %v2639_v11 }
 0x38f   :  { %v2640_v20 = vpop.f32.mrf.mxu2 }
 0x390   :  { %v2715_v17 = vmax.f32 %v2653_v13, 0.0  ;;  %v2641_v22 = vadd.f32 %v2640_v20, %v2627_v21 }
 0x391   :  { %v2666_v25 = vpop.f32.mrf.mxu0 }
 0x392   :  { %2723 = vst [vmem:[#allocation11 + $0x10] sm:$0xff] %v2715_v17  ;;  %v2667_v31 = vadd.f32 %v2666_v25, %v1844_v27 }
 0x395   :  { %v2654_v23 = vpop.f32.mrf.mxu3 }
 0x396   :  { %v2655_v24 = vadd.f32 %v2654_v23, %v2641_v22 }
 0x397   :  { %v2680_v29 = vpop.f32.mrf.mxu1 }
 0x398   :  { %v2719_v52 = vmax.f32 %v2655_v24, 0.0  ;;  %v2681_v32 = vadd.f32 %v2680_v29, %v2667_v31 }
 0x399   :  { %v2668_v34 = vpop.f32.mrf.mxu0 }
 0x39a   :  { %2727 = vst [vmem:[#allocation11 + $0x30] sm:$0xff] %v2719_v52  ;;  %v2669_v28 = vadd.f32 %v2668_v34, %v1844_v27 }
 0x39f   :  { %v2682_v38 = vpop.f32.mrf.mxu1 }
 0x3a0   :  { %v2683_v26 = vadd.f32 %v2682_v38, %v2669_v28 }
 0x3a7   :  { %v2694_v30 = vpop.f32.mrf.mxu2 }
 0x3a8   :  { %v2695_v10 = vadd.f32 %v2694_v30, %v2681_v32 }
 0x3ad   :  { %v2708_v36 = vpop.f32.mrf.mxu3 }
 0x3ae   :  { %v2709_v37 = vadd.f32 %v2708_v36, %v2695_v10 }
 0x3af   :  { %v2696_v40 = vpop.f32.mrf.mxu2 }
 0x3b0   :  { %v2716_v39 = vmax.f32 %v2709_v37, 0.0  ;;  %v2697_v42 = vadd.f32 %v2696_v40, %v2683_v26 }
 0x3b2   :  { %2724 = vst [vmem:[#allocation11 + $0x18] sm:$0xff] %v2716_v39 }
 0x3b5   :  { %v2710_v41 = vpop.f32.mrf.mxu3 }
 0x3b6   :  { %v2711_v35 = vadd.f32 %v2710_v41, %v2697_v42 }
 0x3b8   :  { %v2720_v8 = vmax.f32 %v2711_v35, 0.0 }
 0x3ba   :  { %2728 = vst [vmem:[#allocation11 + $0x38] sm:$0xff] %v2720_v8 }
 0x3bb   :  { %2741 = dma.vmem_to_hbm [thread:$0]  %s2734_s24, 1024, %s2736_s27, [#allocation4], %s4544_s15, %s4544_s15, %s4545_s16  }
 0x3bc   :  { %4537 = dma.done.wait [#allocation4], 1024  }
 0x3bd   :  { %4538 = vsyncadd [#allocation4], 4294966272 }
 0x3be   :  { %2746 = vsyncpa [#allocation3], 1 }
 0x3bf   :  { %2747 = vsyncpa [#allocation6], 1 }
 0x3c0   :  { %2748 = vsyncpa [#allocation9], 1 }
 0x3c1   :  { %2749 = vsyncpa [#allocation4], 1 }

</bundles_post_ra>
